<compile_context>
chip_gen: v7x
topology: tpu7x:2x2x1
jax: 0.10.0
libtpu: 0.0.40
codegen_flags: <defaults>
</compile_context>

<pallas_src>
import functools

import jax
import jax.numpy as jnp
from jax.experimental import pallas as pl
from jax.experimental.pallas import tpu as pltpu


# Below this channel count the SMEM-scalar VPU path is used; above it, the MXU
# einsum path (contraction dim big enough to feed the systolic array).
_SMEM_SCALAR_MAX_CH = 16


def _cdiv(a, b):
    return -(-a // b)


def _round_up(a, b):
    return _cdiv(a, b) * b


# ----------------------------------------------------------------------------
# Generation-aware VMEM planning
# ----------------------------------------------------------------------------
def _tpu_generation_info():
    """Returns (per-core VMEM capacity bytes, chip has multiple TensorCores)."""
    vmem_cap = 64 * 1024 * 1024          # conservative default (v7x per-TC)
    multi_tc = False
    try:
        vmem_cap = int(pltpu.get_tpu_info().vmem_capacity_bytes)
    except Exception:
        pass
    try:
        kind = jax.devices()[0].device_kind.lower()
        if "v7" in kind:
            multi_tc = True
    except Exception:
        pass
    return vmem_cap, multi_tc


def _vmem_plan():
    vmem_cap, multi_tc = _tpu_generation_info()
    if vmem_cap <= 64 * 1024 * 1024:
        # v7x-class: 64 MiB physical per TC -> leave headroom for compiler scratch.
        vmem_limit = 48 * 1024 * 1024
    else:
        # v5e / v6e: 128 MiB physical -> raise well past the scoped default.
        vmem_limit = min(96 * 1024 * 1024, int(0.75 * vmem_cap))
    # Live-tile budget used to size the batch tile (double-buffered I/O + f32
    # intermediates must all fit with margin).
    tile_budget = int(0.45 * vmem_limit)
    return vmem_limit, tile_budget, multi_tc


# ----------------------------------------------------------------------------
# Kernel: one grid step per batch tile; full [Bt, C, HW_pad] tile in VMEM.
# ----------------------------------------------------------------------------
def _prompt_block_kernel(x_ref, w00_ref, b00_ref, w01_ref, b01_ref, w1_ref,
                         b1_ref, o_ref, *, inpl, hide, hw_valid, smem_weights):
    hw_pad = o_ref.shape[-1]
    need_mask = hw_pad != hw_valid
    if need_mask:
        lane = jax.lax.broadcasted_iota(jnp.int32, (1, 1, hw_pad), 2)
        valid = lane < hw_valid

    def softmax_lane(p):
        # softmax over the flattened-spatial (lane) axis, per (batch, channel)
        # row; padded lanes masked out of max and denominator.
        pm = jnp.where(valid, p, -jnp.inf) if need_mask else p
        m = jnp.max(pm, axis=-1, keepdims=True)
        e = jnp.exp(p - m)
        if need_mask:
            e = jnp.where(valid, e, 0.0)
        denom = jnp.sum(e, axis=-1, keepdims=True)
        inv = pl.reciprocal(denom, approx=True)      # EUP slot (otherwise idle)
        inv = inv * (2.0 - denom * inv)              # one Newton step -> ~f32 exact
        return e * inv

    if smem_weights:
        # Tiny channel counts: weights/biases are SMEM scalars; each 1x1 conv
        # is a handful of scalar-splat FMAs on lane-dense [Bt, 1, HW] slabs.
        x0 = [x_ref[:, c:c + 1, :].astype(jnp.float32) for c in range(inpl)]
        x1 = [x_ref[:, inpl + c:inpl + c + 1, :].astype(jnp.float32)
              for c in range(inpl)]

        s = []
        for h in range(hide):
            p0 = x0[0] * w00_ref[h * inpl]
            p1 = x1[0] * w01_ref[h * inpl]
            for c in range(1, inpl):
                p0 = p0 + x0[c] * w00_ref[h * inpl + c]
                p1 = p1 + x1[c] * w01_ref[h * inpl + c]
            p0 = p0 + b00_ref[h]
            p1 = p1 + b01_ref[h]
            s.append(softmax_lane(p0) * p0 + p1)     # fovea(x0) + x1

        for o in range(inpl):
            y = s[0] * w1_ref[o * hide]
            for h in range(1, hide):
                y = y + s[h] * w1_ref[o * hide + h]
            y = y + b1_ref[o]
            o_ref[:, o:o + 1, :] = y.astype(o_ref.dtype)
    else:
        # Larger channel counts: contraction dim feeds the MXU; weights in VMEM.
        x = x_ref[...].astype(jnp.float32)
        x0 = x[:, :inpl, :]
        x1 = x[:, inpl:, :]
        p0 = jnp.einsum("oc,bcs->bos", w00_ref[...], x0,
                        preferred_element_type=jnp.float32) + b00_ref[...][None]
        p1 = jnp.einsum("oc,bcs->bos", w01_ref[...], x1,
                        preferred_element_type=jnp.float32) + b01_ref[...][None]
        s = softmax_lane(p0) * p0 + p1
        out = jnp.einsum("oc,bcs->bos", w1_ref[...], s,
                         preferred_element_type=jnp.float32) + b1_ref[...][None]
        o_ref[...] = out.astype(o_ref.dtype)


# ----------------------------------------------------------------------------
# Wrapper
# ----------------------------------------------------------------------------
def prompt_block_forward(x, params):
    """x: [B, C, H, W] (NCHW, like PyTorch). C == 2 * inplanes."""
    w00, b00, w01, b01, w1, b1 = params            # weights stored [Cout, Cin]
    B, C, H, W = x.shape
    inpl = C // 2
    hide = w00.shape[0]
    HW = H * W
    HW_pad = _round_up(HW, 128)                    # lane-dense last dim
    itemsize = jnp.dtype(x.dtype).itemsize

    xr = x.reshape(B, C, HW)                       # free reshape, no transpose
    if HW_pad != HW:
        xr = jnp.pad(xr, ((0, 0), (0, 0), (0, HW_pad - HW)))

    vmem_limit, tile_budget, multi_tc = _vmem_plan()

    # Per-batch-row VMEM footprint: double-buffered input + output tiles plus
    # in-kernel f32 intermediates (x cast, p0/p1/e, fovea outputs).
    io_bytes = 2 * (C + inpl) * HW_pad * itemsize
    tmp_bytes = (C + 3 * hide + 4) * HW_pad * 4
    per_batch = max(1, io_bytes + tmp_bytes)
    bt = max(1, min(B, tile_budget // per_batch))

    # v7x (2 TensorCores): keep the grid step count even (>= 2) so both cores
    # get equal work and cross-step DMA/compute overlap exists on each core.
    if multi_tc and B >= 2:
        steps = _cdiv(B, bt)
        if steps < 2 or steps % 2 != 0:
            steps = max(2, _cdiv(steps, 2) * 2)
            bt = _cdiv(B, steps)
    grid = (_cdiv(B, bt),)

    use_smem = (inpl <= _SMEM_SCALAR_MAX_CH) and (hide <= _SMEM_SCALAR_MAX_CH)

    kernel = functools.partial(
        _prompt_block_kernel, inpl=inpl, hide=hide, hw_valid=HW,
        smem_weights=use_smem)

    x_spec = pl.BlockSpec((bt, C, HW_pad), lambda i: (i, 0, 0))
    o_spec = pl.BlockSpec((bt, inpl, HW_pad), lambda i: (i, 0, 0))

    if use_smem:
        smem = pl.BlockSpec(memory_space=pltpu.MemorySpace.SMEM)
        in_specs = [x_spec] + [smem] * 6
        w_args = (w00.reshape(-1), b00, w01.reshape(-1), b01,
                  w1.reshape(-1), b1)
    else:
        whole = lambda i: (0, 0)
        in_specs = [
            x_spec,
            pl.BlockSpec((hide, inpl), whole), pl.BlockSpec((hide, 1), whole),
            pl.BlockSpec((hide, inpl), whole), pl.BlockSpec((hide, 1), whole),
            pl.BlockSpec((inpl, hide), whole), pl.BlockSpec((inpl, 1), whole),
        ]
        w_args = (w00, b00.reshape(hide, 1), w01, b01.reshape(hide, 1),
                  w1, b1.reshape(inpl, 1))

    cost = pl.CostEstimate(
        flops=int(B * HW * (6 * inpl * hide + 8 * hide)),
        transcendentals=int(B * hide * HW),
        bytes_accessed=int(B * (C + inpl) * HW * itemsize
                           + (3 * inpl * hide + 2 * hide + inpl) * 4))

    out = pl.pallas_call(
        kernel,
        out_shape=jax.ShapeDtypeStruct((B, inpl, HW_pad), x.dtype),
        grid=grid,
        in_specs=in_specs,
        out_specs=o_spec,
        compiler_params=pltpu.CompilerParams(
            dimension_semantics=("parallel",),
            vmem_limit_bytes=int(vmem_limit)),
        cost_estimate=cost,
    )(xr, *w_args)

    if HW_pad != HW:
        out = out[:, :, :HW]
    return out.reshape(B, inpl, H, W)


# ----------------------------------------------------------------------------
# Deterministic parameter init (xavier_uniform weights, Conv2d-style bias)
# Weights stored as [Cout, Cin] (PyTorch conv weight squeezed).
# ----------------------------------------------------------------------------
def init_params(key, inplanes, hide_channel):
    ks = jax.random.split(key, 6)

    def xavier(k, fan_out, fan_in):
        bound = (6.0 / (fan_in + fan_out)) ** 0.5
        return jax.random.uniform(k, (fan_out, fan_in), jnp.float32, -bound, bound)

    def bias(k, fan_in, n):
        bound = 1.0 / (fan_in ** 0.5)
        return jax.random.uniform(k, (n,), jnp.float32, -bound, bound)

    w00 = xavier(ks[0], hide_channel, inplanes)
    b00 = bias(ks[1], inplanes, hide_channel)
    w01 = xavier(ks[2], hide_channel, inplanes)
    b01 = bias(ks[3], inplanes, hide_channel)
    w1 = xavier(ks[4], inplanes, hide_channel)
    b1 = bias(ks[5], hide_channel, inplanes)
    return (w00, b00, w01, b01, w1, b1)


# ----------------------------------------------------------------------------
# Pure-JAX reference (for correctness check)
# ----------------------------------------------------------------------------
def ref_forward(x, params):
    w00, b00, w01, b01, w1, b1 = params
    B, C, H, W = x.shape
    inpl = C // 2
    x0 = x[:, :inpl]
    x1 = x[:, inpl:]
    p0 = jnp.einsum("bchw,oc->bohw", x0, w00) + b00[None, :, None, None]
    p1 = jnp.einsum("bchw,oc->bohw", x1, w01) + b01[None, :, None, None]
    flat = p0.reshape(B, p0.shape[1], H * W)
    mask = jax.nn.softmax(flat, axis=-1).reshape(p0.shape)
    s = mask * p0 + p1
    return jnp.einsum("bchw,oc->bohw", s, w1) + b1[None, :, None, None]


if __name__ == "__main__":
    B, inplanes, hide_channel, H, W = 2, 4, 4, 16, 16
    C = 2 * inplanes

    key = jax.random.PRNGKey(0)
    kx, kp = jax.random.split(key)
    x = jax.random.normal(kx, (B, C, H, W), dtype=jnp.float32)
    params = init_params(kp, inplanes, hide_channel)

    out = jax.block_until_ready(prompt_block_forward(x, params))
    ref = jax.block_until_ready(ref_forward(x, params))

    assert out.shape == (B, inplanes, H, W)
    assert jnp.allclose(out, ref, atol=1e-5, rtol=1e-5), "mismatch vs reference"

    print("KERNEL_OK")
</pallas_src>

<mosaic_0001>
module attributes {stable_mosaic.version = 11 : i64} {
  func.func @_prompt_block_kernel(%arg0: i32, %arg1: memref<2x8x256xf32, #tpu.memory_space<vmem>>, %arg2: memref<16xf32, #tpu.memory_space<smem>>, %arg3: memref<4xf32, #tpu.memory_space<smem>>, %arg4: memref<16xf32, #tpu.memory_space<smem>>, %arg5: memref<4xf32, #tpu.memory_space<smem>>, %arg6: memref<16xf32, #tpu.memory_space<smem>>, %arg7: memref<4xf32, #tpu.memory_space<smem>>, %arg8: memref<2x4x256xf32, #tpu.memory_space<vmem>>) attributes {dimension_semantics = [#tpu.dimension_semantics<parallel>], iteration_bounds = array<i64: 1>, scalar_prefetch = 0 : i64, scratch_operands = 0 : i64, tpu.core_type = #tpu.core_type<tc>, window_params = [{transform_indices = @transform_0, window_bounds = array<i64: 2, 8, 256>}, {transform_indices = @transform_1, window_bounds = array<i64: 16>}, {transform_indices = @transform_2, window_bounds = array<i64: 4>}, {transform_indices = @transform_3, window_bounds = array<i64: 16>}, {transform_indices = @transform_4, window_bounds = array<i64: 4>}, {transform_indices = @transform_5, window_bounds = array<i64: 16>}, {transform_indices = @transform_6, window_bounds = array<i64: 4>}, {transform_indices = @transform_7, window_bounds = array<i64: 2, 4, 256>}]} {
    %c0 = arith.constant 0 : index
    %c0_0 = arith.constant 0 : index
    %c0_1 = arith.constant 0 : index
    %0 = vector.load %arg1[%c0, %c0_0, %c0_1] : memref<2x8x256xf32, #tpu.memory_space<vmem>>, vector<2x1x256xf32>
    %c0_2 = arith.constant 0 : index
    %c1 = arith.constant 1 : index
    %c0_3 = arith.constant 0 : index
    %1 = vector.load %arg1[%c0_2, %c1, %c0_3] : memref<2x8x256xf32, #tpu.memory_space<vmem>>, vector<2x1x256xf32>
    %c0_4 = arith.constant 0 : index
    %c2 = arith.constant 2 : index
    %c0_5 = arith.constant 0 : index
    %2 = vector.load %arg1[%c0_4, %c2, %c0_5] : memref<2x8x256xf32, #tpu.memory_space<vmem>>, vector<2x1x256xf32>
    %c0_6 = arith.constant 0 : index
    %c3 = arith.constant 3 : index
    %c0_7 = arith.constant 0 : index
    %3 = vector.load %arg1[%c0_6, %c3, %c0_7] : memref<2x8x256xf32, #tpu.memory_space<vmem>>, vector<2x1x256xf32>
    %c0_8 = arith.constant 0 : index
    %c4 = arith.constant 4 : index
    %c0_9 = arith.constant 0 : index
    %4 = vector.load %arg1[%c0_8, %c4, %c0_9] : memref<2x8x256xf32, #tpu.memory_space<vmem>>, vector<2x1x256xf32>
    %c0_10 = arith.constant 0 : index
    %c5 = arith.constant 5 : index
    %c0_11 = arith.constant 0 : index
    %5 = vector.load %arg1[%c0_10, %c5, %c0_11] : memref<2x8x256xf32, #tpu.memory_space<vmem>>, vector<2x1x256xf32>
    %c0_12 = arith.constant 0 : index
    %c6 = arith.constant 6 : index
    %c0_13 = arith.constant 0 : index
    %6 = vector.load %arg1[%c0_12, %c6, %c0_13] : memref<2x8x256xf32, #tpu.memory_space<vmem>>, vector<2x1x256xf32>
    %c0_14 = arith.constant 0 : index
    %c7 = arith.constant 7 : index
    %c0_15 = arith.constant 0 : index
    %7 = vector.load %arg1[%c0_14, %c7, %c0_15] : memref<2x8x256xf32, #tpu.memory_space<vmem>>, vector<2x1x256xf32>
    %c0_16 = arith.constant 0 : index
    %8 = memref.load %arg2[%c0_16] : memref<16xf32, #tpu.memory_space<smem>>
    %9 = vector.broadcast %8 : f32 to vector<2x1x256xf32>
    %10 = arith.mulf %0, %9 : vector<2x1x256xf32>
    %c0_17 = arith.constant 0 : index
    %11 = memref.load %arg4[%c0_17] : memref<16xf32, #tpu.memory_space<smem>>
    %12 = vector.broadcast %11 : f32 to vector<2x1x256xf32>
    %13 = arith.mulf %4, %12 : vector<2x1x256xf32>
    %c1_18 = arith.constant 1 : index
    %14 = memref.load %arg2[%c1_18] : memref<16xf32, #tpu.memory_space<smem>>
    %15 = vector.broadcast %14 : f32 to vector<2x1x256xf32>
    %16 = arith.mulf %1, %15 : vector<2x1x256xf32>
    %17 = arith.addf %10, %16 : vector<2x1x256xf32>
    %c1_19 = arith.constant 1 : index
    %18 = memref.load %arg4[%c1_19] : memref<16xf32, #tpu.memory_space<smem>>
    %19 = vector.broadcast %18 : f32 to vector<2x1x256xf32>
    %20 = arith.mulf %5, %19 : vector<2x1x256xf32>
    %21 = arith.addf %13, %20 : vector<2x1x256xf32>
    %c2_20 = arith.constant 2 : index
    %22 = memref.load %arg2[%c2_20] : memref<16xf32, #tpu.memory_space<smem>>
    %23 = vector.broadcast %22 : f32 to vector<2x1x256xf32>
    %24 = arith.mulf %2, %23 : vector<2x1x256xf32>
    %25 = arith.addf %17, %24 : vector<2x1x256xf32>
    %c2_21 = arith.constant 2 : index
    %26 = memref.load %arg4[%c2_21] : memref<16xf32, #tpu.memory_space<smem>>
    %27 = vector.broadcast %26 : f32 to vector<2x1x256xf32>
    %28 = arith.mulf %6, %27 : vector<2x1x256xf32>
    %29 = arith.addf %21, %28 : vector<2x1x256xf32>
    %c3_22 = arith.constant 3 : index
    %30 = memref.load %arg2[%c3_22] : memref<16xf32, #tpu.memory_space<smem>>
    %31 = vector.broadcast %30 : f32 to vector<2x1x256xf32>
    %32 = arith.mulf %3, %31 : vector<2x1x256xf32>
    %33 = arith.addf %25, %32 : vector<2x1x256xf32>
    %c3_23 = arith.constant 3 : index
    %34 = memref.load %arg4[%c3_23] : memref<16xf32, #tpu.memory_space<smem>>
    %35 = vector.broadcast %34 : f32 to vector<2x1x256xf32>
    %36 = arith.mulf %7, %35 : vector<2x1x256xf32>
    %37 = arith.addf %29, %36 : vector<2x1x256xf32>
    %c0_24 = arith.constant 0 : index
    %38 = memref.load %arg3[%c0_24] : memref<4xf32, #tpu.memory_space<smem>>
    %39 = vector.broadcast %38 : f32 to vector<2x1x256xf32>
    %40 = arith.addf %33, %39 : vector<2x1x256xf32>
    %c0_25 = arith.constant 0 : index
    %41 = memref.load %arg5[%c0_25] : memref<4xf32, #tpu.memory_space<smem>>
    %42 = vector.broadcast %41 : f32 to vector<2x1x256xf32>
    %43 = arith.addf %37, %42 : vector<2x1x256xf32>
    %cst = arith.constant dense<0xFF800000> : vector<2x1xf32>
    %44 = vector.multi_reduction <maximumf>, %40, %cst [2] : vector<2x1x256xf32> to vector<2x1xf32>
    %45 = vector.shape_cast %44 : vector<2x1xf32> to vector<2x1x1xf32>
    %46 = vector.broadcast %45 : vector<2x1x1xf32> to vector<2x1x256xf32>
    %47 = arith.subf %40, %46 : vector<2x1x256xf32>
    %48 = math.exp %47 : vector<2x1x256xf32>
    %cst_26 = arith.constant dense<0.000000e+00> : vector<2x1xf32>
    %49 = vector.multi_reduction <add>, %48, %cst_26 [2] : vector<2x1x256xf32> to vector<2x1xf32>
    %50 = vector.shape_cast %49 : vector<2x1xf32> to vector<2x1x1xf32>
    %51 = tpu.reciprocal %50 {approx = true} : vector<2x1x1xf32> -> vector<2x1x1xf32>
    %52 = arith.mulf %50, %51 : vector<2x1x1xf32>
    %cst_27 = arith.constant 2.000000e+00 : f32
    %53 = vector.broadcast %cst_27 : f32 to vector<2x1x1xf32>
    %54 = arith.subf %53, %52 : vector<2x1x1xf32>
    %55 = arith.mulf %51, %54 : vector<2x1x1xf32>
    %56 = vector.broadcast %55 : vector<2x1x1xf32> to vector<2x1x256xf32>
    %57 = arith.mulf %48, %56 : vector<2x1x256xf32>
    %58 = arith.mulf %57, %40 : vector<2x1x256xf32>
    %59 = arith.addf %58, %43 : vector<2x1x256xf32>
    %c4_28 = arith.constant 4 : index
    %60 = memref.load %arg2[%c4_28] : memref<16xf32, #tpu.memory_space<smem>>
    %61 = vector.broadcast %60 : f32 to vector<2x1x256xf32>
    %62 = arith.mulf %0, %61 : vector<2x1x256xf32>
    %c4_29 = arith.constant 4 : index
    %63 = memref.load %arg4[%c4_29] : memref<16xf32, #tpu.memory_space<smem>>
    %64 = vector.broadcast %63 : f32 to vector<2x1x256xf32>
    %65 = arith.mulf %4, %64 : vector<2x1x256xf32>
    %c5_30 = arith.constant 5 : index
    %66 = memref.load %arg2[%c5_30] : memref<16xf32, #tpu.memory_space<smem>>
    %67 = vector.broadcast %66 : f32 to vector<2x1x256xf32>
    %68 = arith.mulf %1, %67 : vector<2x1x256xf32>
    %69 = arith.addf %62, %68 : vector<2x1x256xf32>
    %c5_31 = arith.constant 5 : index
    %70 = memref.load %arg4[%c5_31] : memref<16xf32, #tpu.memory_space<smem>>
    %71 = vector.broadcast %70 : f32 to vector<2x1x256xf32>
    %72 = arith.mulf %5, %71 : vector<2x1x256xf32>
    %73 = arith.addf %65, %72 : vector<2x1x256xf32>
    %c6_32 = arith.constant 6 : index
    %74 = memref.load %arg2[%c6_32] : memref<16xf32, #tpu.memory_space<smem>>
    %75 = vector.broadcast %74 : f32 to vector<2x1x256xf32>
    %76 = arith.mulf %2, %75 : vector<2x1x256xf32>
    %77 = arith.addf %69, %76 : vector<2x1x256xf32>
    %c6_33 = arith.constant 6 : index
    %78 = memref.load %arg4[%c6_33] : memref<16xf32, #tpu.memory_space<smem>>
    %79 = vector.broadcast %78 : f32 to vector<2x1x256xf32>
    %80 = arith.mulf %6, %79 : vector<2x1x256xf32>
    %81 = arith.addf %73, %80 : vector<2x1x256xf32>
    %c7_34 = arith.constant 7 : index
    %82 = memref.load %arg2[%c7_34] : memref<16xf32, #tpu.memory_space<smem>>
    %83 = vector.broadcast %82 : f32 to vector<2x1x256xf32>
    %84 = arith.mulf %3, %83 : vector<2x1x256xf32>
    %85 = arith.addf %77, %84 : vector<2x1x256xf32>
    %c7_35 = arith.constant 7 : index
    %86 = memref.load %arg4[%c7_35] : memref<16xf32, #tpu.memory_space<smem>>
    %87 = vector.broadcast %86 : f32 to vector<2x1x256xf32>
    %88 = arith.mulf %7, %87 : vector<2x1x256xf32>
    %89 = arith.addf %81, %88 : vector<2x1x256xf32>
    %c1_36 = arith.constant 1 : index
    %90 = memref.load %arg3[%c1_36] : memref<4xf32, #tpu.memory_space<smem>>
    %91 = vector.broadcast %90 : f32 to vector<2x1x256xf32>
    %92 = arith.addf %85, %91 : vector<2x1x256xf32>
    %c1_37 = arith.constant 1 : index
    %93 = memref.load %arg5[%c1_37] : memref<4xf32, #tpu.memory_space<smem>>
    %94 = vector.broadcast %93 : f32 to vector<2x1x256xf32>
    %95 = arith.addf %89, %94 : vector<2x1x256xf32>
    %cst_38 = arith.constant dense<0xFF800000> : vector<2x1xf32>
    %96 = vector.multi_reduction <maximumf>, %92, %cst_38 [2] : vector<2x1x256xf32> to vector<2x1xf32>
    %97 = vector.shape_cast %96 : vector<2x1xf32> to vector<2x1x1xf32>
    %98 = vector.broadcast %97 : vector<2x1x1xf32> to vector<2x1x256xf32>
    %99 = arith.subf %92, %98 : vector<2x1x256xf32>
    %100 = math.exp %99 : vector<2x1x256xf32>
    %cst_39 = arith.constant dense<0.000000e+00> : vector<2x1xf32>
    %101 = vector.multi_reduction <add>, %100, %cst_39 [2] : vector<2x1x256xf32> to vector<2x1xf32>
    %102 = vector.shape_cast %101 : vector<2x1xf32> to vector<2x1x1xf32>
    %103 = tpu.reciprocal %102 {approx = true} : vector<2x1x1xf32> -> vector<2x1x1xf32>
    %104 = arith.mulf %102, %103 : vector<2x1x1xf32>
    %cst_40 = arith.constant 2.000000e+00 : f32
    %105 = vector.broadcast %cst_40 : f32 to vector<2x1x1xf32>
    %106 = arith.subf %105, %104 : vector<2x1x1xf32>
    %107 = arith.mulf %103, %106 : vector<2x1x1xf32>
    %108 = vector.broadcast %107 : vector<2x1x1xf32> to vector<2x1x256xf32>
    %109 = arith.mulf %100, %108 : vector<2x1x256xf32>
    %110 = arith.mulf %109, %92 : vector<2x1x256xf32>
    %111 = arith.addf %110, %95 : vector<2x1x256xf32>
    %c8 = arith.constant 8 : index
    %112 = memref.load %arg2[%c8] : memref<16xf32, #tpu.memory_space<smem>>
    %113 = vector.broadcast %112 : f32 to vector<2x1x256xf32>
    %114 = arith.mulf %0, %113 : vector<2x1x256xf32>
    %c8_41 = arith.constant 8 : index
    %115 = memref.load %arg4[%c8_41] : memref<16xf32, #tpu.memory_space<smem>>
    %116 = vector.broadcast %115 : f32 to vector<2x1x256xf32>
    %117 = arith.mulf %4, %116 : vector<2x1x256xf32>
    %c9 = arith.constant 9 : index
    %118 = memref.load %arg2[%c9] : memref<16xf32, #tpu.memory_space<smem>>
    %119 = vector.broadcast %118 : f32 to vector<2x1x256xf32>
    %120 = arith.mulf %1, %119 : vector<2x1x256xf32>
    %121 = arith.addf %114, %120 : vector<2x1x256xf32>
    %c9_42 = arith.constant 9 : index
    %122 = memref.load %arg4[%c9_42] : memref<16xf32, #tpu.memory_space<smem>>
    %123 = vector.broadcast %122 : f32 to vector<2x1x256xf32>
    %124 = arith.mulf %5, %123 : vector<2x1x256xf32>
    %125 = arith.addf %117, %124 : vector<2x1x256xf32>
    %c10 = arith.constant 10 : index
    %126 = memref.load %arg2[%c10] : memref<16xf32, #tpu.memory_space<smem>>
    %127 = vector.broadcast %126 : f32 to vector<2x1x256xf32>
    %128 = arith.mulf %2, %127 : vector<2x1x256xf32>
    %129 = arith.addf %121, %128 : vector<2x1x256xf32>
    %c10_43 = arith.constant 10 : index
    %130 = memref.load %arg4[%c10_43] : memref<16xf32, #tpu.memory_space<smem>>
    %131 = vector.broadcast %130 : f32 to vector<2x1x256xf32>
    %132 = arith.mulf %6, %131 : vector<2x1x256xf32>
    %133 = arith.addf %125, %132 : vector<2x1x256xf32>
    %c11 = arith.constant 11 : index
    %134 = memref.load %arg2[%c11] : memref<16xf32, #tpu.memory_space<smem>>
    %135 = vector.broadcast %134 : f32 to vector<2x1x256xf32>
    %136 = arith.mulf %3, %135 : vector<2x1x256xf32>
    %137 = arith.addf %129, %136 : vector<2x1x256xf32>
    %c11_44 = arith.constant 11 : index
    %138 = memref.load %arg4[%c11_44] : memref<16xf32, #tpu.memory_space<smem>>
    %139 = vector.broadcast %138 : f32 to vector<2x1x256xf32>
    %140 = arith.mulf %7, %139 : vector<2x1x256xf32>
    %141 = arith.addf %133, %140 : vector<2x1x256xf32>
    %c2_45 = arith.constant 2 : index
    %142 = memref.load %arg3[%c2_45] : memref<4xf32, #tpu.memory_space<smem>>
    %143 = vector.broadcast %142 : f32 to vector<2x1x256xf32>
    %144 = arith.addf %137, %143 : vector<2x1x256xf32>
    %c2_46 = arith.constant 2 : index
    %145 = memref.load %arg5[%c2_46] : memref<4xf32, #tpu.memory_space<smem>>
    %146 = vector.broadcast %145 : f32 to vector<2x1x256xf32>
    %147 = arith.addf %141, %146 : vector<2x1x256xf32>
    %cst_47 = arith.constant dense<0xFF800000> : vector<2x1xf32>
    %148 = vector.multi_reduction <maximumf>, %144, %cst_47 [2] : vector<2x1x256xf32> to vector<2x1xf32>
    %149 = vector.shape_cast %148 : vector<2x1xf32> to vector<2x1x1xf32>
    %150 = vector.broadcast %149 : vector<2x1x1xf32> to vector<2x1x256xf32>
    %151 = arith.subf %144, %150 : vector<2x1x256xf32>
    %152 = math.exp %151 : vector<2x1x256xf32>
    %cst_48 = arith.constant dense<0.000000e+00> : vector<2x1xf32>
    %153 = vector.multi_reduction <add>, %152, %cst_48 [2] : vector<2x1x256xf32> to vector<2x1xf32>
    %154 = vector.shape_cast %153 : vector<2x1xf32> to vector<2x1x1xf32>
    %155 = tpu.reciprocal %154 {approx = true} : vector<2x1x1xf32> -> vector<2x1x1xf32>
    %156 = arith.mulf %154, %155 : vector<2x1x1xf32>
    %cst_49 = arith.constant 2.000000e+00 : f32
    %157 = vector.broadcast %cst_49 : f32 to vector<2x1x1xf32>
    %158 = arith.subf %157, %156 : vector<2x1x1xf32>
    %159 = arith.mulf %155, %158 : vector<2x1x1xf32>
    %160 = vector.broadcast %159 : vector<2x1x1xf32> to vector<2x1x256xf32>
    %161 = arith.mulf %152, %160 : vector<2x1x256xf32>
    %162 = arith.mulf %161, %144 : vector<2x1x256xf32>
    %163 = arith.addf %162, %147 : vector<2x1x256xf32>
    %c12 = arith.constant 12 : index
    %164 = memref.load %arg2[%c12] : memref<16xf32, #tpu.memory_space<smem>>
    %165 = vector.broadcast %164 : f32 to vector<2x1x256xf32>
    %166 = arith.mulf %0, %165 : vector<2x1x256xf32>
    %c12_50 = arith.constant 12 : index
    %167 = memref.load %arg4[%c12_50] : memref<16xf32, #tpu.memory_space<smem>>
    %168 = vector.broadcast %167 : f32 to vector<2x1x256xf32>
    %169 = arith.mulf %4, %168 : vector<2x1x256xf32>
    %c13 = arith.constant 13 : index
    %170 = memref.load %arg2[%c13] : memref<16xf32, #tpu.memory_space<smem>>
    %171 = vector.broadcast %170 : f32 to vector<2x1x256xf32>
    %172 = arith.mulf %1, %171 : vector<2x1x256xf32>
    %173 = arith.addf %166, %172 : vector<2x1x256xf32>
    %c13_51 = arith.constant 13 : index
    %174 = memref.load %arg4[%c13_51] : memref<16xf32, #tpu.memory_space<smem>>
    %175 = vector.broadcast %174 : f32 to vector<2x1x256xf32>
    %176 = arith.mulf %5, %175 : vector<2x1x256xf32>
    %177 = arith.addf %169, %176 : vector<2x1x256xf32>
    %c14 = arith.constant 14 : index
    %178 = memref.load %arg2[%c14] : memref<16xf32, #tpu.memory_space<smem>>
    %179 = vector.broadcast %178 : f32 to vector<2x1x256xf32>
    %180 = arith.mulf %2, %179 : vector<2x1x256xf32>
    %181 = arith.addf %173, %180 : vector<2x1x256xf32>
    %c14_52 = arith.constant 14 : index
    %182 = memref.load %arg4[%c14_52] : memref<16xf32, #tpu.memory_space<smem>>
    %183 = vector.broadcast %182 : f32 to vector<2x1x256xf32>
    %184 = arith.mulf %6, %183 : vector<2x1x256xf32>
    %185 = arith.addf %177, %184 : vector<2x1x256xf32>
    %c15 = arith.constant 15 : index
    %186 = memref.load %arg2[%c15] : memref<16xf32, #tpu.memory_space<smem>>
    %187 = vector.broadcast %186 : f32 to vector<2x1x256xf32>
    %188 = arith.mulf %3, %187 : vector<2x1x256xf32>
    %189 = arith.addf %181, %188 : vector<2x1x256xf32>
    %c15_53 = arith.constant 15 : index
    %190 = memref.load %arg4[%c15_53] : memref<16xf32, #tpu.memory_space<smem>>
    %191 = vector.broadcast %190 : f32 to vector<2x1x256xf32>
    %192 = arith.mulf %7, %191 : vector<2x1x256xf32>
    %193 = arith.addf %185, %192 : vector<2x1x256xf32>
    %c3_54 = arith.constant 3 : index
    %194 = memref.load %arg3[%c3_54] : memref<4xf32, #tpu.memory_space<smem>>
    %195 = vector.broadcast %194 : f32 to vector<2x1x256xf32>
    %196 = arith.addf %189, %195 : vector<2x1x256xf32>
    %c3_55 = arith.constant 3 : index
    %197 = memref.load %arg5[%c3_55] : memref<4xf32, #tpu.memory_space<smem>>
    %198 = vector.broadcast %197 : f32 to vector<2x1x256xf32>
    %199 = arith.addf %193, %198 : vector<2x1x256xf32>
    %cst_56 = arith.constant dense<0xFF800000> : vector<2x1xf32>
    %200 = vector.multi_reduction <maximumf>, %196, %cst_56 [2] : vector<2x1x256xf32> to vector<2x1xf32>
    %201 = vector.shape_cast %200 : vector<2x1xf32> to vector<2x1x1xf32>
    %202 = vector.broadcast %201 : vector<2x1x1xf32> to vector<2x1x256xf32>
    %203 = arith.subf %196, %202 : vector<2x1x256xf32>
    %204 = math.exp %203 : vector<2x1x256xf32>
    %cst_57 = arith.constant dense<0.000000e+00> : vector<2x1xf32>
    %205 = vector.multi_reduction <add>, %204, %cst_57 [2] : vector<2x1x256xf32> to vector<2x1xf32>
    %206 = vector.shape_cast %205 : vector<2x1xf32> to vector<2x1x1xf32>
    %207 = tpu.reciprocal %206 {approx = true} : vector<2x1x1xf32> -> vector<2x1x1xf32>
    %208 = arith.mulf %206, %207 : vector<2x1x1xf32>
    %cst_58 = arith.constant 2.000000e+00 : f32
    %209 = vector.broadcast %cst_58 : f32 to vector<2x1x1xf32>
    %210 = arith.subf %209, %208 : vector<2x1x1xf32>
    %211 = arith.mulf %207, %210 : vector<2x1x1xf32>
    %212 = vector.broadcast %211 : vector<2x1x1xf32> to vector<2x1x256xf32>
    %213 = arith.mulf %204, %212 : vector<2x1x256xf32>
    %214 = arith.mulf %213, %196 : vector<2x1x256xf32>
    %215 = arith.addf %214, %199 : vector<2x1x256xf32>
    %c0_59 = arith.constant 0 : index
    %216 = memref.load %arg6[%c0_59] : memref<16xf32, #tpu.memory_space<smem>>
    %217 = vector.broadcast %216 : f32 to vector<2x1x256xf32>
    %218 = arith.mulf %59, %217 : vector<2x1x256xf32>
    %c1_60 = arith.constant 1 : index
    %219 = memref.load %arg6[%c1_60] : memref<16xf32, #tpu.memory_space<smem>>
    %220 = vector.broadcast %219 : f32 to vector<2x1x256xf32>
    %221 = arith.mulf %111, %220 : vector<2x1x256xf32>
    %222 = arith.addf %218, %221 : vector<2x1x256xf32>
    %c2_61 = arith.constant 2 : index
    %223 = memref.load %arg6[%c2_61] : memref<16xf32, #tpu.memory_space<smem>>
    %224 = vector.broadcast %223 : f32 to vector<2x1x256xf32>
    %225 = arith.mulf %163, %224 : vector<2x1x256xf32>
    %226 = arith.addf %222, %225 : vector<2x1x256xf32>
    %c3_62 = arith.constant 3 : index
    %227 = memref.load %arg6[%c3_62] : memref<16xf32, #tpu.memory_space<smem>>
    %228 = vector.broadcast %227 : f32 to vector<2x1x256xf32>
    %229 = arith.mulf %215, %228 : vector<2x1x256xf32>
    %230 = arith.addf %226, %229 : vector<2x1x256xf32>
    %c0_63 = arith.constant 0 : index
    %231 = memref.load %arg7[%c0_63] : memref<4xf32, #tpu.memory_space<smem>>
    %232 = vector.broadcast %231 : f32 to vector<2x1x256xf32>
    %233 = arith.addf %230, %232 : vector<2x1x256xf32>
    %c0_64 = arith.constant 0 : index
    %c0_65 = arith.constant 0 : index
    %c0_66 = arith.constant 0 : index
    %234 = vector.load %arg8[%c0_64, %c0_65, %c0_66] : memref<2x4x256xf32, #tpu.memory_space<vmem>>, vector<2x1x256xf32>
    tpu.vector_store %arg8[%c0_64, %c0_65, %c0_66], %233 {strides = array<i32>} : memref<2x4x256xf32, #tpu.memory_space<vmem>>, vector<2x1x256xf32>,
    %c4_67 = arith.constant 4 : index
    %235 = memref.load %arg6[%c4_67] : memref<16xf32, #tpu.memory_space<smem>>
    %236 = vector.broadcast %235 : f32 to vector<2x1x256xf32>
    %237 = arith.mulf %59, %236 : vector<2x1x256xf32>
    %c5_68 = arith.constant 5 : index
    %238 = memref.load %arg6[%c5_68] : memref<16xf32, #tpu.memory_space<smem>>
    %239 = vector.broadcast %238 : f32 to vector<2x1x256xf32>
    %240 = arith.mulf %111, %239 : vector<2x1x256xf32>
    %241 = arith.addf %237, %240 : vector<2x1x256xf32>
    %c6_69 = arith.constant 6 : index
    %242 = memref.load %arg6[%c6_69] : memref<16xf32, #tpu.memory_space<smem>>
    %243 = vector.broadcast %242 : f32 to vector<2x1x256xf32>
    %244 = arith.mulf %163, %243 : vector<2x1x256xf32>
    %245 = arith.addf %241, %244 : vector<2x1x256xf32>
    %c7_70 = arith.constant 7 : index
    %246 = memref.load %arg6[%c7_70] : memref<16xf32, #tpu.memory_space<smem>>
    %247 = vector.broadcast %246 : f32 to vector<2x1x256xf32>
    %248 = arith.mulf %215, %247 : vector<2x1x256xf32>
    %249 = arith.addf %245, %248 : vector<2x1x256xf32>
    %c1_71 = arith.constant 1 : index
    %250 = memref.load %arg7[%c1_71] : memref<4xf32, #tpu.memory_space<smem>>
    %251 = vector.broadcast %250 : f32 to vector<2x1x256xf32>
    %252 = arith.addf %249, %251 : vector<2x1x256xf32>
    %c0_72 = arith.constant 0 : index
    %c1_73 = arith.constant 1 : index
    %c0_74 = arith.constant 0 : index
    %253 = vector.load %arg8[%c0_72, %c1_73, %c0_74] : memref<2x4x256xf32, #tpu.memory_space<vmem>>, vector<2x1x256xf32>
    tpu.vector_store %arg8[%c0_72, %c1_73, %c0_74], %252 {strides = array<i32>} : memref<2x4x256xf32, #tpu.memory_space<vmem>>, vector<2x1x256xf32>,
    %c8_75 = arith.constant 8 : index
    %254 = memref.load %arg6[%c8_75] : memref<16xf32, #tpu.memory_space<smem>>
    %255 = vector.broadcast %254 : f32 to vector<2x1x256xf32>
    %256 = arith.mulf %59, %255 : vector<2x1x256xf32>
    %c9_76 = arith.constant 9 : index
    %257 = memref.load %arg6[%c9_76] : memref<16xf32, #tpu.memory_space<smem>>
    %258 = vector.broadcast %257 : f32 to vector<2x1x256xf32>
    %259 = arith.mulf %111, %258 : vector<2x1x256xf32>
    %260 = arith.addf %256, %259 : vector<2x1x256xf32>
    %c10_77 = arith.constant 10 : index
    %261 = memref.load %arg6[%c10_77] : memref<16xf32, #tpu.memory_space<smem>>
    %262 = vector.broadcast %261 : f32 to vector<2x1x256xf32>
    %263 = arith.mulf %163, %262 : vector<2x1x256xf32>
    %264 = arith.addf %260, %263 : vector<2x1x256xf32>
    %c11_78 = arith.constant 11 : index
    %265 = memref.load %arg6[%c11_78] : memref<16xf32, #tpu.memory_space<smem>>
    %266 = vector.broadcast %265 : f32 to vector<2x1x256xf32>
    %267 = arith.mulf %215, %266 : vector<2x1x256xf32>
    %268 = arith.addf %264, %267 : vector<2x1x256xf32>
    %c2_79 = arith.constant 2 : index
    %269 = memref.load %arg7[%c2_79] : memref<4xf32, #tpu.memory_space<smem>>
    %270 = vector.broadcast %269 : f32 to vector<2x1x256xf32>
    %271 = arith.addf %268, %270 : vector<2x1x256xf32>
    %c0_80 = arith.constant 0 : index
    %c2_81 = arith.constant 2 : index
    %c0_82 = arith.constant 0 : index
    %272 = vector.load %arg8[%c0_80, %c2_81, %c0_82] : memref<2x4x256xf32, #tpu.memory_space<vmem>>, vector<2x1x256xf32>
    tpu.vector_store %arg8[%c0_80, %c2_81, %c0_82], %271 {strides = array<i32>} : memref<2x4x256xf32, #tpu.memory_space<vmem>>, vector<2x1x256xf32>,
    %c12_83 = arith.constant 12 : index
    %273 = memref.load %arg6[%c12_83] : memref<16xf32, #tpu.memory_space<smem>>
    %274 = vector.broadcast %273 : f32 to vector<2x1x256xf32>
    %275 = arith.mulf %59, %274 : vector<2x1x256xf32>
    %c13_84 = arith.constant 13 : index
    %276 = memref.load %arg6[%c13_84] : memref<16xf32, #tpu.memory_space<smem>>
    %277 = vector.broadcast %276 : f32 to vector<2x1x256xf32>
    %278 = arith.mulf %111, %277 : vector<2x1x256xf32>
    %279 = arith.addf %275, %278 : vector<2x1x256xf32>
    %c14_85 = arith.constant 14 : index
    %280 = memref.load %arg6[%c14_85] : memref<16xf32, #tpu.memory_space<smem>>
    %281 = vector.broadcast %280 : f32 to vector<2x1x256xf32>
    %282 = arith.mulf %163, %281 : vector<2x1x256xf32>
    %283 = arith.addf %279, %282 : vector<2x1x256xf32>
    %c15_86 = arith.constant 15 : index
    %284 = memref.load %arg6[%c15_86] : memref<16xf32, #tpu.memory_space<smem>>
    %285 = vector.broadcast %284 : f32 to vector<2x1x256xf32>
    %286 = arith.mulf %215, %285 : vector<2x1x256xf32>
    %287 = arith.addf %283, %286 : vector<2x1x256xf32>
    %c3_87 = arith.constant 3 : index
    %288 = memref.load %arg7[%c3_87] : memref<4xf32, #tpu.memory_space<smem>>
    %289 = vector.broadcast %288 : f32 to vector<2x1x256xf32>
    %290 = arith.addf %287, %289 : vector<2x1x256xf32>
    %c0_88 = arith.constant 0 : index
    %c3_89 = arith.constant 3 : index
    %c0_90 = arith.constant 0 : index
    %291 = vector.load %arg8[%c0_88, %c3_89, %c0_90] : memref<2x4x256xf32, #tpu.memory_space<vmem>>, vector<2x1x256xf32>
    tpu.vector_store %arg8[%c0_88, %c3_89, %c0_90], %290 {strides = array<i32>} : memref<2x4x256xf32, #tpu.memory_space<vmem>>, vector<2x1x256xf32>,
    return
  }
  func.func @transform_0(%arg0: i32) -> (i32, i32, i32) {
    %c0_i32 = arith.constant 0 : i32
    %c0_i32_0 = arith.constant 0 : i32
    %c0_i32_1 = arith.constant 0 : i32
    return %arg0, %c0_i32, %c0_i32_0 : i32, i32, i32
  }
  func.func @transform_1(%arg0: i32) -> i32 {
    %c0_i32 = arith.constant 0 : i32
    %c0_i32_0 = arith.constant 0 : i32
    return %c0_i32 : i32
  }
  func.func @transform_2(%arg0: i32) -> i32 {
    %c0_i32 = arith.constant 0 : i32
    %c0_i32_0 = arith.constant 0 : i32
    return %c0_i32 : i32
  }
  func.func @transform_3(%arg0: i32) -> i32 {
    %c0_i32 = arith.constant 0 : i32
    %c0_i32_0 = arith.constant 0 : i32
    return %c0_i32 : i32
  }
  func.func @transform_4(%arg0: i32) -> i32 {
    %c0_i32 = arith.constant 0 : i32
    %c0_i32_0 = arith.constant 0 : i32
    return %c0_i32 : i32
  }
  func.func @transform_5(%arg0: i32) -> i32 {
    %c0_i32 = arith.constant 0 : i32
    %c0_i32_0 = arith.constant 0 : i32
    return %c0_i32 : i32
  }
  func.func @transform_6(%arg0: i32) -> i32 {
    %c0_i32 = arith.constant 0 : i32
    %c0_i32_0 = arith.constant 0 : i32
    return %c0_i32 : i32
  }
  func.func @transform_7(%arg0: i32) -> (i32, i32, i32) {
    %c0_i32 = arith.constant 0 : i32
    %c0_i32_0 = arith.constant 0 : i32
    %c0_i32_1 = arith.constant 0 : i32
    return %arg0, %c0_i32, %c0_i32_0 : i32, i32, i32
  }
}

</mosaic_0001>

<bundles_post_ra>
// kernel: tpu_custom_call.1
= control target key start
LH: loop header
LB: loop body
LE: loop exit
PB: predicated region body
PF: predicated region fallthrough
CT: control target
= control target key end

     0   :  { %12 = vsyncpa [#allocation3], 0  ;;  %s1815_s0 = inlined_call_operand.hbm [shape: f32[2,8,256], index: 0, kind: input, shape index: {}]   ;;  %s1816_s1 = inlined_call_operand.vmem [shape: f32[16], index: 1, kind: input, shape index: {}]   ;;  %s1817_s2 = inlined_call_operand.vmem [shape: f32[4], index: 2, kind: input, shape index: {}]   ;;  %s1818_s3 = inlined_call_operand.vmem [shape: f32[16], index: 3, kind: input, shape index: {}]   ;;  %s1819_s4 = inlined_call_operand.vmem [shape: f32[4], index: 4, kind: input, shape index: {}]   ;;  %s1820_s5 = inlined_call_operand.vmem [shape: f32[16], index: 5, kind: input, shape index: {}]   ;;  %s1821_s6 = inlined_call_operand.vmem [shape: f32[4], index: 6, kind: input, shape index: {}]   ;;  %s1822_s7 = inlined_call_operand.hbm [shape: f32[2,4,256], index: 7, kind: output, shape index: {}]  }
   0x1   :  { %13 = vsyncpa [#allocation5], 0 }
   0x2   :  { %14 = vsyncpa [#allocation8], 0 }
   0x3   :  { %15 = vsyncpa [#allocation11], 0 }
   0x4   :  { %16 = vsyncpa [#allocation14], 0  ;;  %s46_s26 = sshll.u32 %s1817_s2, 4  ;;  %s47_s26 = int_to_ptr.vmem [resolvable:$true] %s46_s26 }
   0x5   :  { %17 = vsyncpa [#allocation4], 0  ;;  %s66_s29 = sshll.u32 %s1819_s4, 4  ;;  %s1026_s30 = scalar_lea.vmem %s47_s26, 16  ;;  %s67_s29 = int_to_ptr.vmem [resolvable:$true] %s66_s29 }
   0x6   :  { %p1027_p0 = scmp.ne.s32.totalorder %s47_s26, %s1026_s30  ;;  %p1031_p1 = scmp.lt.s32.totalorder %s47_s26, %s47_s26 }
   0x7   :  { %p1032_p2 = scmp.lt.s32.totalorder %s1026_s30, %s1026_s30 }
   0x9   :  { %p1033_p3 = por %p1032_p2, %p1031_p1 }
   0xb   :  { %p1034_p4 = pnand %p1033_p3, %p1027_p0 }
   0xd   :  { %1037 = shalt.err (!%p1034_p4)
}
   0xe   :  { %s1154_s8 = smov [#allocation7]   ;;  %s1038_s9 = scalar_lea.vmem %s67_s29, 16 }
   0xf   :  { %49 = dma.vmem_to_smem %s47_s26, 16, %s1154_s8, [#allocation8]  }
  0x10   :  { %p1039_p5 = scmp.ne.s32.totalorder %s67_s29, %s1038_s9  ;;  %p1043_p6 = scmp.lt.s32.totalorder %s67_s29, %s67_s29 }
  0x11   :  { %p1044_p7 = scmp.lt.s32.totalorder %s1038_s9, %s1038_s9 }
  0x13   :  { %p1045_p8 = por %p1044_p7, %p1043_p6 }
  0x15   :  { %p1046_p9 = pnand %p1045_p8, %p1039_p5 }
  0x17   :  { %1049 = shalt.err (!%p1046_p9)
}
  0x18   :  { %s1155_s2 = smov [#allocation10]   ;;  %s1156_s4 = smov [#allocation2]  }
  0x19   :  { %69 = dma.vmem_to_smem %s67_s29, 16, %s1155_s2, [#allocation11]  }
  0x1a   :  { %s23_s10 = sshll.u32 %s1156_s4, 4  ;;  %s36_s13 = sshll.u32 %s1816_s1, 4  ;;  %s24_s10 = int_to_ptr.vmem [resolvable:$true] %s23_s10  ;;  %s37_s13 = int_to_ptr.vmem [resolvable:$true] %s36_s13 }
  0x1b   :  { %s1050_s16 = scalar_lea.hbm %s1815_s0, 512 }
  0x1c   :  { %p1051_p10 = scmp.ne.s32.totalorder %s1815_s0, %s1050_s16  ;;  %p1054_p11 = scmp.lt.u32.totalorder %s1050_s16, %s1815_s0 }
  0x1e   :  { %p1056_p12 = pnand %p1054_p11, %p1051_p10 }
  0x20   :  { %1059 = shalt.err (!%p1056_p12)
}
  0x21   :  { %s1060_s21 = scalar_lea.vmem %s24_s10, 512  ;;  %p1065_p0 = scmp.lt.s32.totalorder %s24_s10, %s24_s10 }
  0x22   :  { %p1061_p13 = scmp.ne.s32.totalorder %s24_s10, %s1060_s21  ;;  %p1066_p1 = scmp.lt.s32.totalorder %s1060_s21, %s1060_s21 }
  0x24   :  { %p1067_p2 = por %p1066_p1, %p1065_p0 }
  0x26   :  { %p1068_p3 = pnand %p1067_p2, %p1061_p13 }
  0x28   :  { %1071 = shalt.err (!%p1068_p3)
}
  0x29   :  { %s1157_s1 = smov 256   ;;  %s1158_s22 = smov 16  }
  0x2a   :  { %29 = dma.hbm_to_vmem [thread:$0]  %s1815_s0, 512, %s24_s10, [#allocation3], %s1157_s1, %s1157_s1, %s1158_s22  }
  0x2b   :  { %s1072_s25 = scalar_lea.vmem %s37_s13, 16  ;;  %p1077_p5 = scmp.lt.s32.totalorder %s37_s13, %s37_s13 }
  0x2c   :  { %p1073_p4 = scmp.ne.s32.totalorder %s37_s13, %s1072_s25  ;;  %p1078_p6 = scmp.lt.s32.totalorder %s1072_s25, %s1072_s25 }
  0x2e   :  { %p1079_p7 = por %p1078_p6, %p1077_p5 }
  0x30   :  { %p1080_p8 = pnand %p1079_p7, %p1073_p4 }
  0x32   :  { %1083 = shalt.err (!%p1080_p8)
}
  0x33   :  { %s1159_s26 = smov [#allocation6]   ;;  %s56_s29 = sshll.u32 %s1818_s3, 4  ;;  %s57_s29 = int_to_ptr.vmem [resolvable:$true] %s56_s29 }
  0x34   :  { %39 = dma.vmem_to_smem %s37_s13, 16, %s1159_s26, [#allocation5]  }
  0x35   :  { %s76_s9 = sshll.u32 %s1820_s5, 4  ;;  %s1084_s0 = scalar_lea.vmem %s57_s29, 16  ;;  %s77_s9 = int_to_ptr.vmem [resolvable:$true] %s76_s9 }
  0x36   :  { %p1085_p9 = scmp.ne.s32.totalorder %s57_s29, %s1084_s0  ;;  %p1089_p10 = scmp.lt.s32.totalorder %s57_s29, %s57_s29 }
  0x37   :  { %p1090_p11 = scmp.lt.s32.totalorder %s1084_s0, %s1084_s0 }
  0x39   :  { %p1091_p12 = por %p1090_p11, %p1089_p10 }
  0x3b   :  { %p1092_p13 = pnand %p1091_p12, %p1085_p9 }
  0x3d   :  { %1095 = shalt.err (!%p1092_p13)
}
  0x3e   :  { %s1160_s2 = smov [#allocation9]   ;;  %s1096_s4 = scalar_lea.vmem %s77_s9, 16 }
  0x3f   :  { %59 = dma.vmem_to_smem %s57_s29, 16, %s1160_s2, [#allocation8]  }
  0x40   :  { %p1097_p0 = scmp.ne.s32.totalorder %s77_s9, %s1096_s4  ;;  %p1101_p1 = scmp.lt.s32.totalorder %s77_s9, %s77_s9 }
  0x41   :  { %p1102_p2 = scmp.lt.s32.totalorder %s1096_s4, %s1096_s4 }
  0x43   :  { %p1103_p3 = por %p1102_p2, %p1101_p1 }
  0x45   :  { %p1104_p4 = pnand %p1103_p3, %p1097_p0 }
  0x47   :  { %1107 = shalt.err (!%p1104_p4)
}
  0x48   :  { %s1161_s3 = smov [#allocation12]   ;;  %s86_s11 = sshll.u32 %s1821_s6, 4  ;;  %s87_s11 = int_to_ptr.vmem [resolvable:$true] %s86_s11 }
  0x49   :  { %79 = dma.vmem_to_smem %s77_s9, 16, %s1161_s3, [#allocation11]  }
  0x4a   :  { %s1108_s12 = scalar_lea.vmem %s87_s11, 16  ;;  %p1113_p6 = scmp.lt.s32.totalorder %s87_s11, %s87_s11 }
  0x4b   :  { %p1109_p5 = scmp.ne.s32.totalorder %s87_s11, %s1108_s12  ;;  %p1114_p7 = scmp.lt.s32.totalorder %s1108_s12, %s1108_s12 }
  0x4d   :  { %p1115_p8 = por %p1114_p7, %p1113_p6 }
  0x4f   :  { %p1116_p9 = pnand %p1115_p8, %p1109_p5 }
  0x51   :  { %1119 = shalt.err (!%p1116_p9)
}
  0x52   :  { %s1162_s13 = smov [#allocation13]  }
  0x53   :  { %89 = dma.vmem_to_smem %s87_s11, 16, %s1162_s13, [#allocation14]  }
  0x54   :  { %1142 = dma.done.wait [#allocation3], 512  }
  0x55   :  { %1143 = vsyncadd [#allocation3], 4294966784 }
  0x56   :  { %1144 = dma.done.wait [#allocation5], 16  }
  0x57   :  { %1145 = vsyncadd [#allocation5], 4294967280 }
  0x58   :  { %1146 = dma.done.wait [#allocation8], 32  }
  0x59   :  { %1147 = vsyncadd [#allocation8], 4294967264 }
  0x5a   :  { %1148 = dma.done.wait [#allocation11], 32  }
  0x5b   :  { %1149 = vsyncadd [#allocation11], 4294967264 }
  0x5c   :  { %1150 = dma.done.wait [#allocation14], 16  }
  0x5d   :  { %1151 = vsyncadd [#allocation14], 4294967280 }
  0x5e   :  { %111 = sfence }
  0x5f   :  { %v1823_v0 = vlaneseq  ;;  %s1236_s6 = sld [smem:[#allocation6]]  ;;  %s1238_s14 = sld [smem:[#allocation6 + $0x1]]  ;;  %v1245_v2 = vld [vmem:[#allocation2] ss:$8 sm:$0x3]  ;;  %vm217_vm0 = vcmask 1040384  }
  0x60   :  { %s1240_s15 = sld [smem:[#allocation6 + $0x2]]  ;;  %s1242_s16 = sld [smem:[#allocation6 + $0x3]]  ;;  %v1247_v3 = vld [vmem:[#allocation2 + $0x1] ss:$8 sm:$0x3] }
  0x61   :  { %v198_v1 = vshrl.u32 %v1823_v0, 7  ;;  %s1249_s17 = sld [smem:[#allocation7]]  ;;  %s1251_s18 = sld [smem:[#allocation6 + $0x4]]  ;;  %v1253_v4 = vld [vmem:[#allocation2 + $0x2] ss:$8 sm:$0x3] }
  0x62   :  { %s1255_s19 = sld [smem:[#allocation6 + $0x5]]  ;;  %s1257_s20 = sld [smem:[#allocation6 + $0x6]]  ;;  %v1263_v5 = vld [vmem:[#allocation2 + $0x3] ss:$8 sm:$0x3] }
  0x63   :  { %s1259_s21 = sld [smem:[#allocation6 + $0x7]]  ;;  %s1261_s1 = sld [smem:[#allocation7 + $0x1]]  ;;  %v1265_v6 = vsub.s32 0, %v198_v1  ;;  %v1267_v7 = vsub.s32 1, %v198_v1 }
  0x64   :  { %v1271_v10 = vld [vmem:[#allocation2 + $0x10] ss:$8 sm:$0x3]  ;;  %v1273_v11 = vld [vmem:[#allocation2 + $0x11] ss:$8 sm:$0x3] }
  0x65   :  { %v144_v8 = vstv %s1236_s6  ;;  %v152_v9 = vstv %s1238_s14  ;;  %s1279_s22 = sld [smem:[#allocation6 + $0x8]]  ;;  %s1281_s23 = sld [smem:[#allocation6 + $0x9]]  ;;  %v1294_v24 = vld [vmem:[#allocation2 + $0x12] ss:$8 sm:$0x3] }
  0x66   :  { %v145_v12 = vmul.f32 %v144_v8, %v1245_v2  ;;  %v153_v13 = vmul.f32 %v152_v9, %v1247_v3  ;;  %v164_v14 = vstv %s1240_s15  ;;  %v176_v15 = vstv %s1242_s16  ;;  %s1287_s24 = sld [smem:[#allocation6 + $0xa]]  ;;  %s1289_s25 = sld [smem:[#allocation6 + $0xb]]  ;;  %v1296_v25 = vld [vmem:[#allocation2 + $0x13] ss:$8 sm:$0x3] }
  0x67   :  { %v165_v16 = vmul.f32 %v164_v14, %v1253_v4  ;;  %v177_v17 = vmul.f32 %v176_v15, %v1263_v5  ;;  %v188_v18 = vstv %s1249_s17  ;;  %v305_v19 = vstv %s1251_s18  ;;  %s1310_s26 = sld [smem:[#allocation7 + $0x2]]  ;;  %s1325_s27 = sld [smem:[#allocation6 + $0xc]] }
  0x68   :  { %v155_v20 = vadd.f32 %v153_v13, %v145_v12  ;;  %v306_v21 = vmul.f32 %v305_v19, %v1245_v2  ;;  %v313_v22 = vstv %s1255_s19  ;;  %v325_v23 = vstv %s1257_s20  ;;  %s1335_s28 = sld [smem:[#allocation6 + $0xd]]  ;;  %s1337_s29 = sld [smem:[#allocation6 + $0xe]] }
  0x69   :  { %v314_v26 = vmul.f32 %v313_v22, %v1247_v3  ;;  %v326_v27 = vmul.f32 %v325_v23, %v1253_v4  ;;  %v337_v28 = vstv %s1259_s21  ;;  %v349_v29 = vstv %s1261_s1  ;;  %s1350_s30 = sld [smem:[#allocation6 + $0xf]]  ;;  %s1368_s8 = sld [smem:[#allocation7 + $0x3]] }
  0x6a   :  { %v167_v30 = vadd.f32 %v165_v16, %v155_v20  ;;  %v338_v31 = vmul.f32 %v337_v28, %v1263_v5  ;;  %v146_v32 = vmul.f32 %v144_v8, %v1271_v10  ;;  %v154_v33 = vmul.f32 %v152_v9, %v1273_v11  ;;  %s147_s9 = sld [smem:[#allocation9]]  ;;  %s929_s0 = sld [smem:[#allocation9 + $0x1]] }
  0x6b   :  { %v316_v34 = vadd.f32 %v314_v26, %v306_v21  ;;  %v166_v35 = vmul.f32 %v164_v14, %v1294_v24  ;;  %v178_v36 = vmul.f32 %v176_v15, %v1296_v25  ;;  %v307_v37 = vmul.f32 %v305_v19, %v1271_v10  ;;  %s1493_s2 = sld [smem:[#allocation9 + $0x2]]  ;;  %s1495_s4 = sld [smem:[#allocation9 + $0x4]] }
  0x6c   :  { %v179_v38 = vadd.f32 %v177_v17, %v167_v30  ;;  %v156_v39 = vadd.f32 %v154_v33, %v146_v32  ;;  %v315_v40 = vmul.f32 %v313_v22, %v1273_v11  ;;  %v327_v41 = vmul.f32 %v325_v23, %v1294_v24  ;;  %s1497_s3 = sld [smem:[#allocation9 + $0x5]]  ;;  %s1503_s5 = sld [smem:[#allocation9 + $0x3]] }
  0x6d   :  { %v328_v42 = vadd.f32 %v326_v27, %v316_v34  ;;  %v339_v43 = vmul.f32 %v337_v28, %v1296_v25  ;;  %v465_v44 = vstv %s1279_s22  ;;  %v473_v45 = vstv %s1281_s23  ;;  %s1505_s10 = sld [smem:[#allocation9 + $0x6]]  ;;  %s1511_s11 = sld [smem:[#allocation9 + $0x8]] }
  0x6e   :  { %v1315_v46 = vadd.f32 %v188_v18, %v179_v38  ;;  %v168_v47 = vadd.f32 %v166_v35, %v156_v39  ;;  %v317_v48 = vadd.f32 %v315_v40, %v307_v37  ;;  %v466_v49 = vmul.f32 %v465_v44, %v1245_v2  ;;  %s1513_s12 = sld [smem:[#allocation9 + $0x9]]  ;;  %s1522_s13 = sld [smem:[#allocation9 + $0x7]] }
  0x6f   :  { %v340_v50 = vadd.f32 %v338_v31, %v328_v42  ;;  %v474_v51 = vmul.f32 %v473_v45, %v1247_v3  ;;  %v485_v52 = vstv %s1287_s24  ;;  %v497_v53 = vstv %s1289_s25  ;;  %s1527_s6 = sld [smem:[#allocation10]]  ;;  %s1536_s14 = sld [smem:[#allocation9 + $0xa]] }
  0x70   :  { %v200_v54 = vrot.slane %v1315_v46, %v1265_v6  ;;  %v204_v55 = vrot.slane %v1315_v46, %v1267_v7  ;;  %v180_v56 = vadd.f32 %v178_v36, %v168_v47  ;;  %v329_v57 = vadd.f32 %v327_v41, %v317_v48  ;;  %s1538_s15 = sld [smem:[#allocation12]]  ;;  %s1540_s16 = sld [smem:[#allocation12 + $0x4]] }
  0x71   :  { %v1327_v58 = vadd.f32 %v349_v29, %v340_v50  ;;  %v476_v59 = vadd.f32 %v474_v51, %v466_v49  ;;  %v486_v60 = vmul.f32 %v485_v52, %v1253_v4  ;;  %v498_v61 = vmul.f32 %v497_v53, %v1263_v5  ;;  %s1543_s17 = sld [smem:[#allocation12 + $0x8]]  ;;  %s1545_s18 = sld [smem:[#allocation12 + $0xc]] }
  0x72   :  { %v218_v62 = vsel %vm217_vm0, %v200_v54, -inf  ;;  %v219_v63 = vsel %vm217_vm0, %v204_v55, -inf  ;;  %v1333_v1 = vadd.f32 %v188_v18, %v180_v56  ;;  %v341_v8 = vadd.f32 %v339_v43, %v329_v57  ;;  %s1552_s19 = sld [smem:[#allocation10 + $0x1]]  ;;  %s1556_s20 = sld [smem:[#allocation9 + $0xb]] }
  0x73   :  { %v220_v9 = vmax.f32 %v218_v62, %v219_v63  ;;  %v361_v12 = vrot.slane %v1327_v58, %v1265_v6  ;;  %v365_v13 = vrot.slane %v1327_v58, %v1267_v7  ;;  %v488_v14 = vadd.f32 %v486_v60, %v476_v59  ;;  %s1559_s21 = sld [smem:[#allocation9 + $0xc]]  ;;  %s1561_s1 = sld [smem:[#allocation9 + $0xd]] }
  0x74   :  { %v208_v15 = vrot.slane %v1333_v1, %v1265_v6  ;;  %v212_v16 = vrot.slane %v1333_v1, %v1267_v7  ;;  %v1347_v17 = vadd.f32 %v349_v29, %v341_v8  ;;  %v509_v18 = vstv %s1310_s26  ;;  %s1569_s22 = sld [smem:[#allocation12 + $0x1]]  ;;  %s1575_s23 = sld [smem:[#allocation12 + $0x5]] }
  0x75   :  { %221 = vmax.xlane.f32.xlu0 %v220_v9  ;;  %v378_v19 = vsel %vm217_vm0, %v361_v12, -inf  ;;  %v379_v20 = vsel %vm217_vm0, %v365_v13, -inf  ;;  %v500_v21 = vadd.f32 %v498_v61, %v488_v14  ;;  %v467_v22 = vmul.f32 %v465_v44, %v1271_v10  ;;  %s1577_s24 = sld [smem:[#allocation9 + $0xe]]  ;;  %s1581_s25 = sld [smem:[#allocation12 + $0x9]] }
  0x76   :  { %v380_v23 = vmax.f32 %v378_v19, %v379_v20  ;;  %v223_v26 = vsel %vm217_vm0, %v208_v15, -inf  ;;  %v224_v27 = vsel %vm217_vm0, %v212_v16, -inf  ;;  %v369_v28 = vrot.slane %v1347_v17, %v1265_v6  ;;  %s1588_s26 = sld [smem:[#allocation9 + $0xf]] }
  0x77   :  { %v225_v29 = vmax.f32 %v223_v26, %v224_v27  ;;  %v373_v30 = vrot.slane %v1347_v17, %v1267_v7  ;;  %v1361_v31 = vadd.f32 %v509_v18, %v500_v21  ;;  %v475_v32 = vmul.f32 %v473_v45, %v1273_v11 }
  0x78   :  { %381 = vmax.xlane.f32.xlu1 %v380_v23  ;;  %v383_v33 = vsel %vm217_vm0, %v369_v28, -inf  ;;  %v487_v34 = vmul.f32 %v485_v52, %v1294_v24  ;;  %v499_v35 = vmul.f32 %v497_v53, %v1296_v25  ;;  %v625_v36 = vstv %s1325_s27  ;;  %s1594_s27 = sld [smem:[#allocation10 + $0x2]] }
  0x79   :  { %226 = vmax.xlane.f32.xlu0 %v225_v29  ;;  %v384_v37 = vsel %vm217_vm0, %v373_v30, -inf  ;;  %v521_v38 = vrot.slane %v1361_v31, %v1265_v6  ;;  %v525_v39 = vrot.slane %v1361_v31, %v1267_v7  ;;  %v477_v40 = vadd.f32 %v475_v32, %v467_v22 }
  0x7a   :  { %v385_v41 = vmax.f32 %v383_v33, %v384_v37  ;;  %v626_v42 = vmul.f32 %v625_v36, %v1245_v2  ;;  %v633_v43 = vstv %s1335_s28  ;;  %v645_v44 = vstv %s1337_s29  ;;  %s1611_s28 = sld [smem:[#allocation12 + $0xd]]  ;;  %s1615_s29 = sld [smem:[#allocation12 + $0x2]] }
  0x7b   :  { %v538_v45 = vsel %vm217_vm0, %v521_v38, -inf  ;;  %v539_v47 = vsel %vm217_vm0, %v525_v39, -inf  ;;  %v489_v48 = vadd.f32 %v487_v34, %v477_v40  ;;  %v634_v49 = vmul.f32 %v633_v43, %v1247_v3 }
  0x7c   :  { %386 = vmax.xlane.f32.xlu1 %v385_v41  ;;  %v540_v50 = vmax.f32 %v538_v45, %v539_v47  ;;  %v646_v51 = vmul.f32 %v645_v44, %v1253_v4  ;;  %v657_v52 = vstv %s1350_s30  ;;  %v627_v2 = vmul.f32 %v625_v36, %v1271_v10  ;;  %s1619_s30 = sld [smem:[#allocation12 + $0x6]] }
  0x7d   :  { %v501_v53 = vadd.f32 %v499_v35, %v489_v48  ;;  %v636_v54 = vadd.f32 %v634_v49, %v626_v42  ;;  %v658_v55 = vmul.f32 %v657_v52, %v1263_v5  ;;  %v635_v56 = vmul.f32 %v633_v43, %v1273_v11 }
  0x7e   :  { %541 = vmax.xlane.f32.xlu0 %v540_v50  ;;  %v647_v57 = vmul.f32 %v645_v44, %v1294_v24  ;;  %v669_v3 = vstv %s1368_s8  ;;  %v659_v62 = vmul.f32 %v657_v52, %v1296_v25  ;;  %v651_v0 = vstv %s1577_s24  ;;  %s1627_s8 = sld [smem:[#allocation12 + $0xa]] }
  0x7f   :  { %v1387_v59 = vadd.f32 %v509_v18, %v501_v53  ;;  %v648_v60 = vadd.f32 %v646_v51, %v636_v54  ;;  %v637_v61 = vadd.f32 %v635_v56, %v627_v2 }
  0x81   :  { %v529_v4 = vrot.slane %v1387_v59, %v1265_v6  ;;  %v533_v5 = vrot.slane %v1387_v59, %v1267_v7  ;;  %v660_v63 = vadd.f32 %v658_v55, %v648_v60  ;;  %v649_v10 = vadd.f32 %v647_v57, %v637_v61 }
  0x83   :  { %v543_v8 = vsel %vm217_vm0, %v529_v4, -inf  ;;  %v544_v11 = vsel %vm217_vm0, %v533_v5, -inf  ;;  %v1397_v24 = vadd.f32 %v669_v3, %v660_v63  ;;  %v661_v12 = vadd.f32 %v659_v62, %v649_v10 }
  0x84   :  { %v545_v9 = vmax.f32 %v543_v8, %v544_v11 }
  0x85   :  { %v681_v13 = vrot.slane %v1397_v24, %v1265_v6  ;;  %v685_v25 = vrot.slane %v1397_v24, %v1267_v7  ;;  %v1403_v14 = vadd.f32 %v669_v3, %v661_v12 }
  0x86   :  { %546 = vmax.xlane.f32.xlu1 %v545_v9 }
  0x87   :  { %v698_v15 = vsel %vm217_vm0, %v681_v13, -inf  ;;  %v699_v16 = vsel %vm217_vm0, %v685_v25, -inf  ;;  %v689_v19 = vrot.slane %v1403_v14, %v1265_v6  ;;  %v693_v20 = vrot.slane %v1403_v14, %v1267_v7 }
  0x88   :  { %v700_v18 = vmax.f32 %v698_v15, %v699_v16 }
  0x89   :  { %v703_v21 = vsel %vm217_vm0, %v689_v19, -inf  ;;  %v704_v22 = vsel %vm217_vm0, %v693_v20, -inf }
  0x8a   :  { %701 = vmax.xlane.f32.xlu0 %v700_v18  ;;  %v705_v23 = vmax.f32 %v703_v21, %v704_v22 }
  0x8c   :  { %706 = vmax.xlane.f32.xlu1 %v705_v23 }
 0x102   :  { %v222_v26 = vpop.xlane.xlu0 %221 }
 0x103   :  { %v233_v27 = vrot.slane %v222_v26, %v1265_v6 }
 0x105   :  { %v240_v28 = vsub.f32 %v1315_v46, %v233_v27  ;;  %v382_v29 = vpop.xlane.xlu1 %381 }
 0x106   :  { %v393_v30 = vrot.slane %v382_v29, %v1265_v6  ;;  %v227_v32 = vpop.xlane.xlu0 %226 }
 0x107   :  { %v242_v33 = vmul.f32 1.442695, %v240_v28  ;;  %v237_v34 = vrot.slane %v227_v32, %v1265_v6 }
 0x108   :  { %v400_v35 = vsub.f32 %v1327_v58, %v393_v30 }
 0x109   :  { %994 = vpow2.f32 %v242_v33  ;;  %v241_v36 = vsub.f32 %v1333_v1, %v237_v34  ;;  %v387_v37 = vpop.xlane.xlu1 %386 }
 0x10a   :  { %v402_v38 = vmul.f32 1.442695, %v400_v35  ;;  %v397_v39 = vrot.slane %v387_v37, %v1265_v6 }
 0x10b   :  { %v244_v40 = vmul.f32 1.442695, %v241_v36  ;;  %v542_v41 = vpop.xlane.xlu0 %541 }
 0x10c   :  { %996 = vpow2.f32 %v402_v38  ;;  %v401_v42 = vsub.f32 %v1347_v17, %v397_v39  ;;  %v553_v43 = vrot.slane %v542_v41, %v1265_v6 }
 0x10d   :  { %998 = vpow2.f32 %v244_v40 }
 0x10e   :  { %v404_v44 = vmul.f32 1.442695, %v401_v42  ;;  %v560_v45 = vsub.f32 %v1361_v31, %v553_v43 }
 0x110   :  { %1000 = vpow2.f32 %v404_v44  ;;  %v562_v47 = vmul.f32 1.442695, %v560_v45 }
 0x112   :  { %1002 = vpow2.f32 %v562_v47 }
 0x113   :  { %v1423_v48 = vpop.eup %994  ;;  %v547_v49 = vpop.xlane.xlu1 %546 }
 0x114   :  { %v557_v50 = vrot.slane %v547_v49, %v1265_v6  ;;  %v251_v51 = vrot.slane %v1423_v48, %v1265_v6  ;;  %v255_v52 = vrot.slane %v1423_v48, %v1267_v7 }
 0x116   :  { %v1430_v53 = vpop.eup %996  ;;  %v561_v54 = vsub.f32 %v1387_v59, %v557_v50  ;;  %v268_v55 = vsel %vm217_vm0, %v251_v51, 0.0  ;;  %v269_v2 = vsel %vm217_vm0, %v255_v52, 0.0 }
 0x117   :  { %v1435_v56 = vpop.eup %998  ;;  %v702_v57 = vpop.xlane.xlu0 %701  ;;  %v270_v60 = vadd.f32 %v269_v2, %v268_v55  ;;  %v411_v3 = vrot.slane %v1430_v53, %v1265_v6  ;;  %v415_v61 = vrot.slane %v1430_v53, %v1267_v7 }
 0x118   :  { %v564_v62 = vmul.f32 1.442695, %v561_v54  ;;  %v713_v4 = vrot.slane %v702_v57, %v1265_v6  ;;  %v259_v5 = vrot.slane %v1435_v56, %v1265_v6  ;;  %v263_v63 = vrot.slane %v1435_v56, %v1267_v7  ;;  %v1499_v57 = vld [vmem:[#allocation2 + $0x4] ss:$8 sm:$0x3] }
 0x119   :  { %271 = vadd.xlane.f32.xlu0 %v270_v60  ;;  %v428_v10 = vsel %vm217_vm0, %v411_v3, 0.0  ;;  %v429_v8 = vsel %vm217_vm0, %v415_v61, 0.0  ;;  %v707_v12 = vpop.xlane.xlu1 %706  ;;  %v148_v60 = vstv %s147_s9  ;;  %v158_v3 = vstv %s929_s0  ;;  %v1507_v61 = vld [vmem:[#allocation2 + $0x6] ss:$8 sm:$0x3]  ;;  %s1630_s9 = sld [smem:[#allocation10 + $0x3]] }
 0x11a   :  { %v1448_v11 = vpop.eup %1000  ;;  %1004 = vpow2.f32 %v564_v62  ;;  %v720_v9 = vsub.f32 %v1397_v24, %v713_v4  ;;  %v430_v13 = vadd.f32 %v429_v8, %v428_v10  ;;  %v273_v25 = vsel %vm217_vm0, %v259_v5, 0.0  ;;  %v1518_v10 = vld [vmem:[#allocation2 + $0x15] ss:$8 sm:$0x3]  ;;  %s1633_s0 = sld [smem:[#allocation12 + $0xe]] }
 0x11b   :  { %v717_v15 = vrot.slane %v707_v12, %v1265_v6  ;;  %v274_v16 = vsel %vm217_vm0, %v263_v63, 0.0  ;;  %v419_v18 = vrot.slane %v1448_v11, %v1265_v6  ;;  %v423_v19 = vrot.slane %v1448_v11, %v1267_v7  ;;  %v1516_v63 = vld [vmem:[#allocation2 + $0x14] ss:$8 sm:$0x3] }
 0x11c   :  { %v1458_v20 = vpop.eup %1002  ;;  %v722_v21 = vmul.f32 1.442695, %v720_v9  ;;  %v275_v22 = vadd.f32 %v274_v16, %v273_v25  ;;  %v149_v62 = vmul.f32 %v148_v60, %v1499_v57  ;;  %v170_v5 = vstv %s1493_s2  ;;  %v1524_v12 = vld [vmem:[#allocation2 + $0x7] ss:$8 sm:$0x3]  ;;  %s1635_s2 = sld [smem:[#allocation12 + $0x3]] }
 0x11d   :  { %v721_v23 = vsub.f32 %v1403_v14, %v717_v15  ;;  %431 = vadd.xlane.f32.xlu0 %v430_v13  ;;  %v433_v26 = vsel %vm217_vm0, %v419_v18, 0.0  ;;  %v434_v27 = vsel %vm217_vm0, %v423_v19, 0.0  ;;  %v571_v28 = vrot.slane %v1458_v20, %v1265_v6  ;;  %v1532_v19 = vld [vmem:[#allocation2 + $0x16] ss:$8 sm:$0x3] }
 0x11e   :  { %1006 = vpow2.f32 %v722_v21  ;;  %276 = vadd.xlane.f32.xlu1 %v275_v22  ;;  %v435_v29 = vadd.f32 %v434_v27, %v433_v26  ;;  %v575_v30 = vrot.slane %v1458_v20, %v1267_v7  ;;  %v309_v8 = vstv %s1495_s4  ;;  %s1639_s4 = sld [smem:[#allocation12 + $0x7]] }
 0x11f   :  { %v724_v32 = vmul.f32 1.442695, %v721_v23  ;;  %v588_v33 = vsel %vm217_vm0, %v571_v28, 0.0  ;;  %v319_v9 = vstv %s1497_s3  ;;  %v171_v25 = vmul.f32 %v170_v5, %v1507_v61  ;;  %s1641_s3 = sld [smem:[#allocation12 + $0xb]] }
 0x120   :  { %v589_v34 = vsel %vm217_vm0, %v575_v30, 0.0  ;;  %v150_v15 = vmul.f32 %v148_v60, %v1516_v63  ;;  %v160_v16 = vmul.f32 %v158_v3, %v1518_v10  ;;  %v182_v18 = vstv %s1503_s5  ;;  %s1644_s5 = sld [smem:[#allocation12 + $0xf]] }
 0x121   :  { %1008 = vpow2.f32 %v724_v32  ;;  %v590_v35 = vadd.f32 %v589_v34, %v588_v33  ;;  %v310_v21 = vmul.f32 %v309_v8, %v1499_v57  ;;  %v331_v26 = vstv %s1505_s10  ;;  %s1649_s10 = sld [smem:[#allocation13]] }
 0x122   :  { %436 = vadd.xlane.f32.xlu1 %v435_v29  ;;  %v183_v28 = vmul.f32 %v182_v18, %v1524_v12  ;;  %v1548_v29 = vld [vmem:[#allocation2 + $0x17] ss:$8 sm:$0x3]  ;;  %v162_v30 = vadd.f32 %v160_v16, %v150_v15  ;;  %v172_v32 = vmul.f32 %v170_v5, %v1532_v19  ;;  %v332_v34 = vmul.f32 %v331_v26, %v1507_v61 }
 0x123   :  { %591 = vadd.xlane.f32.xlu0 %v590_v35  ;;  %v469_v35 = vstv %s1511_s11  ;;  %v785_v60 = vstv %s1538_s15  ;;  %s1656_s11 = sld [smem:[#allocation13 + $0x1]] }
 0x124   :  { %v1469_v36 = vpop.eup %1004 }
 0x125   :  { %v579_v37 = vrot.slane %v1469_v36, %v1265_v6  ;;  %v583_v38 = vrot.slane %v1469_v36, %v1267_v7 }
 0x127   :  { %v593_v39 = vsel %vm217_vm0, %v579_v37, 0.0  ;;  %v594_v40 = vsel %vm217_vm0, %v583_v38, 0.0  ;;  %v479_v37 = vstv %s1513_s12  ;;  %v343_v38 = vstv %s1522_s13  ;;  %s1658_s12 = sld [smem:[#allocation13 + $0x2]]  ;;  %s1663_s13 = sld [smem:[#allocation13 + $0x3]] }
 0x128   :  { %v1477_v41 = vpop.eup %1006  ;;  %v595_v42 = vadd.f32 %v594_v40, %v593_v39  ;;  %v184_v40 = vmul.f32 %v182_v18, %v1548_v29 }
 0x129   :  { %v731_v43 = vrot.slane %v1477_v41, %v1265_v6  ;;  %v735_v44 = vrot.slane %v1477_v41, %v1267_v7 }
 0x12a   :  { %596 = vadd.xlane.f32.xlu1 %v595_v42 }
 0x12b   :  { %v1483_v45 = vpop.eup %1008  ;;  %v748_v47 = vsel %vm217_vm0, %v731_v43, 0.0  ;;  %v749_v49 = vsel %vm217_vm0, %v735_v44, 0.0  ;;  %v311_v43 = vmul.f32 %v309_v8, %v1516_v63  ;;  %v321_v44 = vmul.f32 %v319_v9, %v1518_v10 }
 0x12c   :  { %v750_v50 = vadd.f32 %v749_v49, %v748_v47  ;;  %v739_v51 = vrot.slane %v1483_v45, %v1265_v6  ;;  %v743_v52 = vrot.slane %v1483_v45, %v1267_v7  ;;  %v1501_v7 = vld [vmem:[#allocation2 + $0x5] ss:$8 sm:$0x3]  ;;  %v174_v47 = vadd.f32 %v172_v32, %v162_v30 }
 0x12d   :  { %v159_v4 = vmul.f32 %v158_v3, %v1501_v7  ;;  %v320_v22 = vmul.f32 %v319_v9, %v1501_v7  ;;  %v470_v49 = vmul.f32 %v469_v35, %v1499_v57  ;;  %v818_v3 = vstv %s1540_s16 }
 0x12e   :  { %751 = vadd.xlane.f32.xlu0 %v750_v50  ;;  %v753_v54 = vsel %vm217_vm0, %v739_v51, 0.0  ;;  %v754_v55 = vsel %vm217_vm0, %v743_v52, 0.0  ;;  %v480_v50 = vmul.f32 %v479_v37, %v1501_v7  ;;  %v323_v5 = vadd.f32 %v321_v44, %v311_v43 }
 0x12f   :  { %v755_v2 = vadd.f32 %v754_v55, %v753_v54  ;;  %v161_v13 = vadd.f32 %v159_v4, %v149_v62  ;;  %v322_v33 = vadd.f32 %v320_v22, %v310_v21  ;;  %v344_v54 = vmul.f32 %v343_v38, %v1524_v12 }
 0x130   :  { %v491_v55 = vstv %s1536_s14  ;;  %v848_v62 = vstv %s1543_s17  ;;  %v333_v8 = vmul.f32 %v331_v26, %v1532_v19  ;;  %v353_v26 = vstv %s1552_s19 }
 0x131   :  { %756 = vadd.xlane.f32.xlu1 %v755_v2  ;;  %v173_v27 = vadd.f32 %v171_v25, %v161_v13  ;;  %v334_v52 = vadd.f32 %v332_v34, %v322_v33  ;;  %v192_v2 = vstv %s1527_s6  ;;  %v186_v13 = vadd.f32 %v184_v40, %v174_v47  ;;  %s1163_s6 = smov [#allocation15]  }
 0x132   :  { %v482_v25 = vadd.f32 %v480_v50, %v470_v49  ;;  %v492_v15 = vmul.f32 %v491_v55, %v1507_v61  ;;  %v629_v30 = vstv %s1559_s21  ;;  %v639_v32 = vstv %s1561_s1  ;;  %s912_s14 = sshll.u32 %s1163_s6, 4  ;;  %s913_s14 = int_to_ptr.vmem [resolvable:$true] %s912_s14 }
 0x133   :  { %v185_v51 = vadd.f32 %v183_v28, %v173_v27  ;;  %v346_v22 = vadd.f32 %v344_v54, %v334_v52  ;;  %v503_v27 = vstv %s1556_s20  ;;  %v335_v33 = vadd.f32 %v333_v8, %v323_v5  ;;  %s1120_s15 = scalar_lea.vmem %s913_s14, 256  ;;  %p1125_p11 = scmp.lt.s32.totalorder %s913_s14, %s913_s14 }
 0x134   :  { %v345_v34 = vmul.f32 %v343_v38, %v1548_v29  ;;  %v471_v40 = vmul.f32 %v469_v35, %v1516_v63  ;;  %v481_v43 = vmul.f32 %v479_v37, %v1518_v10  ;;  %v1598_v47 = vadd.f32 %v192_v2, %v186_v13  ;;  %p1121_p10 = scmp.ne.s32.totalorder %s913_s14, %s1120_s15  ;;  %p1126_p12 = scmp.lt.s32.totalorder %s1120_s15, %s1120_s15 }
 0x135   :  { %v1585_v21 = vadd.f32 %v192_v2, %v185_v51  ;;  %v494_v49 = vadd.f32 %v492_v15, %v482_v25  ;;  %v1603_v51 = vadd.f32 %v353_v26, %v346_v22  ;;  %v789_v52 = vstv %s1569_s22 }
 0x136   :  { %v630_v38 = vmul.f32 %v629_v30, %v1499_v57  ;;  %v640_v54 = vmul.f32 %v639_v32, %v1501_v7  ;;  %v822_v8 = vstv %s1575_s23  ;;  %v852_v13 = vstv %s1581_s25  ;;  %p1127_p13 = por %p1126_p12, %p1125_p11 }
 0x137   :  { %v347_v25 = vadd.f32 %v345_v34, %v335_v33  ;;  %v483_v15 = vadd.f32 %v481_v43, %v471_v40  ;;  %v493_v57 = vmul.f32 %v491_v55, %v1532_v19  ;;  %v631_v43 = vmul.f32 %v629_v30, %v1516_v63 }
 0x138   :  { %p1128_p0 = pnand %p1127_p13, %p1121_p10 }
 0x139   :  { %v495_v63 = vadd.f32 %v493_v57, %v483_v15  ;;  %v882_v15 = vstv %s1611_s28 }
 0x1a6   :  { %v272_v23 = vpop.xlane.xlu0 %271 }
 0x1a7   :  { %1010 = vrcp.f32 %v272_v23 }
 0x1aa   :  { %v432_v39 = vpop.xlane.xlu0 %431 }
 0x1ab   :  { %v277_v42 = vpop.xlane.xlu1 %276  ;;  %1012 = vrcp.f32 %v432_v39 }
 0x1ac   :  { %1014 = vrcp.f32 %v277_v42 }
 0x1af   :  { %v437_v9 = vpop.xlane.xlu1 %436 }
 0x1b0   :  { %1016 = vrcp.f32 %v437_v9  ;;  %v592_v16 = vpop.xlane.xlu0 %591 }
 0x1b1   :  { %v1011_v18 = vpop.eup %1010  ;;  %1018 = vrcp.f32 %v592_v16 }
 0x1b2   :  { %v280_v28 = vmul.f32 %v1011_v18, %v272_v23  ;;  %v504_v23 = vmul.f32 %v503_v27, %v1524_v12 }
 0x1b4   :  { %v282_v44 = vsub.f32 2.0, %v280_v28  ;;  %v506_v4 = vadd.f32 %v504_v23, %v494_v49 }
 0x1b5   :  { %v1013_v50 = vpop.eup %1012 }
 0x1b6   :  { %v1015_v5 = vpop.eup %1014  ;;  %v284_v35 = vmul.f32 %v1011_v18, %v282_v44  ;;  %v440_v37 = vmul.f32 %v1013_v50, %v432_v39  ;;  %v642_v39 = vadd.f32 %v640_v54, %v630_v38  ;;  %v663_v18 = vstv %s1588_s26 }
 0x1b7   :  { %v281_v2 = vmul.f32 %v1015_v5, %v277_v42  ;;  %v1613_v28 = vpop.xlane.xlu1 %596  ;;  %v652_v42 = vmul.f32 %v651_v0, %v1507_v61  ;;  %v641_v44 = vmul.f32 %v639_v32, %v1518_v10 }
 0x1b8   :  { %v442_v22 = vsub.f32 2.0, %v440_v37  ;;  %1020 = vrcp.f32 %v1613_v28  ;;  %v291_v34 = vrot.slane %v284_v35, %v1265_v6  ;;  %v513_v37 = vstv %s1594_s27 }
 0x1b9   :  { %v283_v7 = vsub.f32 2.0, %v281_v2  ;;  %v505_v2 = vmul.f32 %v503_v27, %v1548_v29  ;;  %v654_v30 = vadd.f32 %v652_v42, %v642_v39  ;;  %v664_v27 = vmul.f32 %v663_v18, %v1524_v12 }
 0x1ba   :  { %v1017_v33 = vpop.eup %1016  ;;  %v444_v40 = vmul.f32 %v1013_v50, %v442_v22  ;;  %v298_v32 = vmul.f32 %v1423_v48, %v291_v34  ;;  %v643_v54 = vadd.f32 %v641_v44, %v631_v43  ;;  %v355_v12 = vadd.f32 %v353_v26, %v347_v25 }
 0x1bb   :  { %v1019_v49 = vpop.eup %1018  ;;  %v285_v23 = vmul.f32 %v1015_v5, %v283_v7  ;;  %v441_v55 = vmul.f32 %v1017_v33, %v437_v9  ;;  %v752_v61 = vpop.xlane.xlu0 %751  ;;  %v653_v5 = vmul.f32 %v651_v0, %v1532_v19  ;;  %v1653_v7 = vadd.f32 %v513_v37, %v506_v4 }
 0x1bc   :  { %v451_v38 = vrot.slane %v444_v40, %v1265_v6  ;;  %v600_v50 = vmul.f32 %v1019_v49, %v592_v16  ;;  %1022 = vrcp.f32 %v752_v61  ;;  %v795_v48 = vstv %s1615_s29 }
 0x1bd   :  { %v295_v10 = vrot.slane %v285_v23, %v1265_v6  ;;  %v443_v9 = vsub.f32 2.0, %v441_v55  ;;  %v507_v39 = vadd.f32 %v505_v2, %v495_v63  ;;  %v828_v19 = vstv %s1619_s30 }
 0x1be   :  { %v602_v16 = vsub.f32 2.0, %v600_v50  ;;  %v757_v35 = vpop.xlane.xlu1 %756  ;;  %v458_v22 = vmul.f32 %v1430_v53, %v451_v38  ;;  %v300_v26 = vmul.f32 %v298_v32, %v1315_v46  ;;  %v666_v25 = vadd.f32 %v664_v27, %v654_v30 }
 0x1bf   :  { %v445_v57 = vmul.f32 %v1017_v33, %v443_v9  ;;  %1024 = vrcp.f32 %v757_v35  ;;  %v299_v0 = vmul.f32 %v1435_v56, %v295_v10  ;;  %v655_v33 = vadd.f32 %v653_v5, %v643_v54 }
 0x1c0   :  { %v604_v42 = vmul.f32 %v1019_v49, %v602_v16  ;;  %v665_v34 = vmul.f32 %v663_v18, %v1548_v29  ;;  %v460_v40 = vmul.f32 %v458_v22, %v1327_v58  ;;  %v858_v56 = vstv %s1627_s8 }
 0x1c1   :  { %v455_v53 = vrot.slane %v445_v57, %v1265_v6  ;;  %v673_v44 = vstv %s1630_s9  ;;  %v888_v23 = vstv %s1633_s0  ;;  %v515_v55 = vadd.f32 %v513_v37, %v507_v39 }
 0x1c2   :  { %v1021_v4 = vpop.eup %1020  ;;  %v611_v43 = vrot.slane %v604_v42, %v1265_v6  ;;  %v301_v46 = vmul.f32 %v299_v0, %v1333_v1  ;;  %v801_v38 = vstv %s1635_s2  ;;  %v834_v29 = vstv %s1639_s4 }
 0x1c3   :  { %v459_v49 = vmul.f32 %v1448_v11, %v455_v53  ;;  %v601_v2 = vmul.f32 %v1021_v4, %v1613_v28  ;;  %v864_v18 = vstv %s1641_s3  ;;  %v302_v58 = vadd.f32 %v300_v26, %v1585_v21 }
 0x1c4   :  { %v1679_v63 = vadd.f32 %v673_v44, %v666_v25  ;;  %v894_v11 = vstv %s1644_s5  ;;  %v667_v10 = vadd.f32 %v665_v34, %v655_v33  ;;  %v462_v37 = vadd.f32 %v460_v40, %v1603_v51 }
 0x1c5   :  { %v618_v28 = vmul.f32 %v1458_v20, %v611_v43  ;;  %v603_v9 = vsub.f32 2.0, %v601_v2  ;;  %v461_v30 = vmul.f32 %v459_v49, %v1347_v17  ;;  %v807_v27 = vstv %s1649_s10 }
 0x1c6   :  { %v1023_v50 = vpop.eup %1022  ;;  %v840_v32 = vstv %s1656_s11  ;;  %v870_v21 = vstv %s1658_s12  ;;  %v303_v54 = vadd.f32 %v301_v46, %v1598_v47  ;;  %v900_v51 = vstv %s1663_s13 }
 0x1c7   :  { %v760_v1 = vmul.f32 %v1023_v50, %v752_v61  ;;  %v605_v5 = vmul.f32 %v1021_v4, %v603_v9  ;;  %v786_v22 = vmul.f32 %v785_v60, %v302_v58  ;;  %v620_v61 = vmul.f32 %v618_v28, %v1361_v31 }
 0x1c8   :  { %v675_v17 = vadd.f32 %v673_v44, %v667_v10  ;;  %v819_v39 = vmul.f32 %v818_v3, %v302_v58  ;;  %v849_v47 = vmul.f32 %v848_v62, %v302_v58  ;;  %v790_v0 = vmul.f32 %v789_v52, %v462_v37 }
 0x1c9   :  { %v1025_v16 = vpop.eup %1024  ;;  %v762_v20 = vsub.f32 2.0, %v760_v1  ;;  %v823_v53 = vmul.f32 %v822_v8, %v462_v37  ;;  %v463_v42 = vadd.f32 %v461_v30, %v355_v12  ;;  %v615_v4 = vrot.slane %v605_v5, %v1265_v6 }
 0x1ca   :  { %v761_v57 = vmul.f32 %v1025_v16, %v757_v35  ;;  %v1824_v31 = vstv %s1545_s18  ;;  %v787_v35 = vmul.f32 %v785_v60, %v303_v54  ;;  %v820_v34 = vmul.f32 %v818_v3, %v303_v54 }
 0x1cb   :  { %v764_v26 = vmul.f32 %v1023_v50, %v762_v20  ;;  %v879_v33 = vmul.f32 %v1824_v31, %v302_v58  ;;  %v853_v40 = vmul.f32 %v852_v13, %v462_v37  ;;  %v850_v43 = vmul.f32 %v848_v62, %v303_v54 }
 0x1cc   :  { %v763_v25 = vsub.f32 2.0, %v761_v57  ;;  %v1825_v44 = vmov %v1824_v31  ;;  %v883_v49 = vmul.f32 %v882_v15, %v462_v37  ;;  %v622_v2 = vadd.f32 %v620_v61, %v1653_v7 }
 0x1cd   :  { %v880_v12 = vmul.f32 %v1825_v44, %v303_v54  ;;  %v792_v46 = vadd.f32 %v790_v0, %v786_v22  ;;  %v619_v60 = vmul.f32 %v1469_v36, %v615_v4  ;;  %v771_v3 = vrot.slane %v764_v26, %v1265_v6 }
 0x1ce   :  { %v765_v50 = vmul.f32 %v1025_v16, %v763_v25  ;;  %v825_v58 = vadd.f32 %v823_v53, %v819_v39  ;;  %v791_v62 = vmul.f32 %v789_v52, %v463_v42  ;;  %v824_v10 = vmul.f32 %v822_v8, %v463_v42 }
 0x1cf   :  { %v854_v28 = vmul.f32 %v852_v13, %v463_v42  ;;  %v855_v9 = vadd.f32 %v853_v40, %v849_v47  ;;  %v621_v37 = vmul.f32 %v619_v60, %v1387_v59  ;;  %v778_v7 = vmul.f32 %v1477_v41, %v771_v3 }
 0x1d0   :  { %v775_v1 = vrot.slane %v765_v50, %v1265_v6  ;;  %v884_v36 = vmul.f32 %v882_v15, %v463_v42  ;;  %v796_v30 = vmul.f32 %v795_v48, %v622_v2  ;;  %v829_v52 = vmul.f32 %v828_v19, %v622_v2 }
 0x1d1   :  { %v859_v8 = vmul.f32 %v858_v56, %v622_v2  ;;  %v889_v13 = vmul.f32 %v888_v23, %v622_v2  ;;  %v623_v16 = vadd.f32 %v621_v37, %v515_v55  ;;  %v1826_v59 = vlaneseq }
 0x1d2   :  { %v780_v6 = vmul.f32 %v778_v7, %v1397_v24  ;;  %v779_v41 = vmul.f32 %v1483_v45, %v775_v1  ;;  %v885_v15 = vadd.f32 %v883_v49, %v879_v33  ;;  %v793_v5 = vadd.f32 %v791_v62, %v787_v35 }
 0x1d3   :  { %vm1739_vm1 = vcmp.lt.s32.totalorder %v1826_v59, 256  ;;  %v826_v20 = vadd.f32 %v824_v10, %v820_v34  ;;  %v856_v22 = vadd.f32 %v854_v28, %v850_v43  ;;  %v797_v61 = vmul.f32 %v795_v48, %v623_v16 }
 0x1d4   :  { %v830_v55 = vmul.f32 %v828_v19, %v623_v16  ;;  %v860_v57 = vmul.f32 %v858_v56, %v623_v16  ;;  %v890_v39 = vmul.f32 %v888_v23, %v623_v16  ;;  %v886_v47 = vadd.f32 %v884_v36, %v880_v12 }
 0x1d5   :  { %v798_v24 = vadd.f32 %v796_v30, %v792_v46  ;;  %v782_v45 = vadd.f32 %v780_v6, %v1679_v63  ;;  %v781_v0 = vmul.f32 %v779_v41, %v1403_v14  ;;  %v831_v53 = vadd.f32 %v829_v52, %v825_v58 }
 0x1d6   :  { %v861_v42 = vadd.f32 %v859_v8, %v855_v9  ;;  %v891_v4 = vadd.f32 %v889_v13, %v885_v15  ;;  %v799_v26 = vadd.f32 %v797_v61, %v793_v5  ;;  %v832_v14 = vadd.f32 %v830_v55, %v826_v20 }
 0x1d7   :  { %v802_v48 = vmul.f32 %v801_v38, %v782_v45  ;;  %v835_v19 = vmul.f32 %v834_v29, %v782_v45  ;;  %v865_v56 = vmul.f32 %v864_v18, %v782_v45  ;;  %v895_v23 = vmul.f32 %v894_v11, %v782_v45 }
 0x1d8   :  { %v862_v63 = vadd.f32 %v860_v57, %v856_v22  ;;  %v892_v25 = vadd.f32 %v890_v39, %v886_v47  ;;  %v783_v31 = vadd.f32 %v781_v0, %v675_v17 }
 0x1d9   :  { %v804_v33 = vadd.f32 %v802_v48, %v798_v24  ;;  %v837_v35 = vadd.f32 %v835_v19, %v831_v53  ;;  %v867_v34 = vadd.f32 %v865_v56, %v861_v42  ;;  %v897_v40 = vadd.f32 %v895_v23, %v891_v4 }
 0x1da   :  { %v803_v43 = vmul.f32 %v801_v38, %v783_v31  ;;  %v836_v44 = vmul.f32 %v834_v29, %v783_v31  ;;  %v866_v12 = vmul.f32 %v864_v18, %v783_v31  ;;  %v896_v49 = vmul.f32 %v894_v11, %v783_v31 }
 0x1db   :  { %v808_v2 = vadd.f32 %v807_v27, %v804_v33  ;;  %v841_v46 = vadd.f32 %v840_v32, %v837_v35  ;;  %v871_v17 = vadd.f32 %v870_v21, %v867_v34  ;;  %v901_v60 = vadd.f32 %v900_v51, %v897_v40 }
 0x1dc   :  { %v805_v38 = vadd.f32 %v803_v43, %v799_v26  ;;  %v838_v29 = vadd.f32 %v836_v44, %v832_v14  ;;  %v868_v3 = vadd.f32 %v866_v12, %v862_v63  ;;  %v898_v18 = vadd.f32 %v896_v49, %v892_v25 }
 0x1dd   :  { %814 = vst.msk [vmem:[#allocation15] ss:$4 sm:$0x3] %vm1739_vm1, %v808_v2  ;;  %844 = vst.msk [vmem:[#allocation15 + $0x1] ss:$4 sm:$0x3] %vm1739_vm1, %v841_v46 }
 0x1de   :  { %874 = vst.msk [vmem:[#allocation15 + $0x2] ss:$4 sm:$0x3] %vm1739_vm1, %v871_v17  ;;  %904 = vst.msk [vmem:[#allocation15 + $0x3] ss:$4 sm:$0x3] %vm1739_vm1, %v901_v60  ;;  %v809_v11 = vadd.f32 %v807_v27, %v805_v38  ;;  %v842_v50 = vadd.f32 %v840_v32, %v838_v29  ;;  %v872_v58 = vadd.f32 %v870_v21, %v868_v3 }
 0x1df   :  { %v902_v62 = vadd.f32 %v900_v51, %v898_v18 }
 0x1e0   :  { %816 = vst.msk [vmem:[#allocation15 + $0x8] ss:$4 sm:$0x3] %vm1739_vm1, %v809_v11  ;;  %846 = vst.msk [vmem:[#allocation15 + $0x9] ss:$4 sm:$0x3] %vm1739_vm1, %v842_v50 }
 0x1e1   :  { %876 = vst.msk [vmem:[#allocation15 + $0xa] ss:$4 sm:$0x3] %vm1739_vm1, %v872_v58  ;;  %906 = vst.msk [vmem:[#allocation15 + $0xb] ss:$4 sm:$0x3] %vm1739_vm1, %v902_v62 }
 0x1e2   :  { %1131 = shalt.err (!%p1128_p0)
}
 0x1e3   :  { %s1132_s18 = scalar_lea.hbm %s1822_s7, 256 }
 0x1e4   :  { %p1133_p1 = scmp.ne.s32.totalorder %s1822_s7, %s1132_s18  ;;  %p1136_p2 = scmp.lt.u32.totalorder %s1132_s18, %s1822_s7 }
 0x1e6   :  { %p1138_p3 = pnand %p1136_p2, %p1133_p1 }
 0x1e8   :  { %1141 = shalt.err (!%p1138_p3)
}
 0x1e9   :  { %s1164_s22 = smov 128   ;;  %s1165_s23 = smov 8  }
 0x1ea   :  { %918 = dma.vmem_to_hbm [thread:$0]  %s913_s14, 256, %s1822_s7, [#allocation4], %s1164_s22, %s1164_s22, %s1165_s23  }
 0x1eb   :  { %1152 = dma.done.wait [#allocation4], 256  }
 0x1ec   :  { %1153 = vsyncadd [#allocation4], 4294967040 }
 0x1ed   :  { %922 = vsyncpa [#allocation3], 1 }
 0x1ee   :  { %923 = vsyncpa [#allocation4], 1 }
 0x1ef   :  { %924 = vsyncpa [#allocation5], 1 }
 0x1f0   :  { %925 = vsyncpa [#allocation8], 1 }
 0x1f1   :  { %926 = vsyncpa [#allocation11], 1 }
 0x1f2   :  { %927 = vsyncpa [#allocation14], 1 }

</bundles_post_ra>
